<compile_context>
chip_gen: v7x
topology: tpu7x:2x2x1
jax: 0.10.0
libtpu: 0.0.40
codegen_flags: <defaults>
</compile_context>

<pallas_src>
import math

import jax
import jax.numpy as jnp
import numpy as np
from jax.experimental import pallas as pl
from jax.experimental.pallas import tpu as pltpu

# ---- model hyper-parameters (small, deterministic) ----
B = 2            # batch
S = 8            # src sequence length
D = 32           # d_model
H = 4            # num heads
DH = D // H      # head dim
F = 64           # feed-forward dim
NUM_LAYERS = 2
EPS = 1e-5
CLS_PAD = 8      # CLS rows padded up to one full sublane group


def _layernorm_rows_onepass(x, g, b):
    # One-pass LN: mean and mean(x^2) are independent reductions; var = E[x^2]-mu^2.
    mu = jnp.mean(x, axis=-1, keepdims=True)
    ms = jnp.mean(x * x, axis=-1, keepdims=True)
    var = ms - mu * mu
    return (x - mu) * jax.lax.rsqrt(var + EPS) * g + b


# ---------------------------------------------------------------------------
# Pallas kernel: all layers for a block of Bk batch elements in one invocation
# ---------------------------------------------------------------------------
def encoder_kernel(cls_ref, src_ref,
                   wkvs_ref, bkvs_ref, wcls_ref, bcls_ref,
                   wo_ref, bo_ref, g1_ref, be1_ref,
                   w1_ref, b1_ref, w2_ref, b2_ref, g2_ref, be2_ref,
                   hsum_ref, hexp_ref,
                   out_ref):
    Bk = cls_ref.shape[0]          # batch elements handled by this program
    n_src = Bk * S                 # src rows (multiple of 8)
    reps = CLS_PAD // Bk           # pad CLS rows up to a full 8-row group

    cls = cls_ref[...].reshape(Bk, D)        # carried across layers
    src = src_ref[...].reshape(n_src, D)     # fixed keys/values source

    hsum = hsum_ref[...]           # (D, H) per-head score reduce indicator
    hexp = hexp_ref[...]           # (H, D) head -> lane expand indicator

    # ---- hoisted, cls-independent: src K/V for ALL layers in one matmul ----
    kv_src = jnp.dot(src, wkvs_ref[...],
                     preferred_element_type=jnp.float32) + bkvs_ref[...]   # (n_src, 2*D*L)
    k_src = [kv_src[:, 2 * D * l:2 * D * l + D] for l in range(NUM_LAYERS)]
    v_src = [kv_src[:, 2 * D * l + D:2 * D * (l + 1)] for l in range(NUM_LAYERS)]

    def stack_rows(x_cls, x_src):
        # [CLS rows duplicated up to 8 (padded rows are never read) ; src rows]
        return jnp.concatenate([jnp.concatenate([x_cls] * reps, axis=0), x_src], axis=0)

    for l in range(NUM_LAYERS):    # static unroll; weights indexed per layer
        # ---- CLS-side fused [q*scale | k | v] projection (scale folded in) ----
        qkv_c = jnp.dot(cls, wcls_ref[l],
                        preferred_element_type=jnp.float32) + bcls_ref[l]   # (Bk, 3D)
        q = qkv_c[:, 0:D]
        k_c = qkv_c[:, D:2 * D]
        v_c = qkv_c[:, 2 * D:3 * D]

        # ---- single per-head score matmul over the 8+n_src stacked rows ----
        q_src = jnp.broadcast_to(q[:, None, :], (Bk, S, D)).reshape(n_src, D)
        qk = stack_rows(q * k_c, q_src * k_src[l])                          # (R, D)
        scores = jnp.dot(qk, hsum, preferred_element_type=jnp.float32)      # (R, H)

        # ---- softmax over the S+1 keys of each (batch, head); single exp ----
        s_c = scores[0:Bk]                                                  # (Bk, H)
        s_s = scores[CLS_PAD:CLS_PAD + n_src].reshape(Bk, S, H)
        m = jnp.maximum(s_c, jnp.max(s_s, axis=1))                          # (Bk, H)
        m_src = jnp.broadcast_to(m[:, None, :], (Bk, S, H)).reshape(n_src, H)
        p = jnp.exp(scores - stack_rows(m, m_src))                          # (R, H)
        den = p[0:Bk] + jnp.sum(p[CLS_PAD:CLS_PAD + n_src].reshape(Bk, S, H), axis=1)
        inv = 1.0 / den                                                     # exact (Bk, H)
        inv_src = jnp.broadcast_to(inv[:, None, :], (Bk, S, H)).reshape(n_src, H)
        w = p * stack_rows(inv, inv_src)                                    # normalized probs

        # ---- single head->lane expansion, then context + output projection ----
        w_exp = jnp.dot(w, hexp, preferred_element_type=jnp.float32)        # (R, D)
        ctx = w_exp[0:Bk] * v_c + jnp.sum(
            (w_exp[CLS_PAD:CLS_PAD + n_src] * v_src[l]).reshape(Bk, S, D), axis=1)
        attn = jnp.dot(ctx, wo_ref[l],
                       preferred_element_type=jnp.float32) + bo_ref[l]      # (Bk, D)

        # ---- residual + LayerNorm 1 ----
        x = _layernorm_rows_onepass(cls + attn, g1_ref[l], be1_ref[l])

        # ---- feed-forward (tanh-approx GELU) + residual + LayerNorm 2 ----
        h1 = jnp.dot(x, w1_ref[l], preferred_element_type=jnp.float32) + b1_ref[l]
        h1 = jax.nn.gelu(h1, approximate=True)
        h2 = jnp.dot(h1, w2_ref[l], preferred_element_type=jnp.float32) + b2_ref[l]
        cls = _layernorm_rows_onepass(x + h2, g2_ref[l], be2_ref[l])

    out_ref[...] = cls.reshape(Bk, 1, D).astype(out_ref.dtype)


# ---------------------------------------------------------------------------
# One-time parameter packing (off the per-call path)
# ---------------------------------------------------------------------------
def pack_params(layer_params):
    scale = 1.0 / math.sqrt(DH)
    # src-side stacked K/V weight:  [Wk_0 | Wv_0 | Wk_1 | Wv_1 | ...]  -> (D, 2*D*L)
    wkvs = jnp.concatenate(
        [jnp.concatenate([p["wk"], p["wv"]], axis=1) for p in layer_params], axis=1)
    bkvs = jnp.concatenate(
        [jnp.concatenate([p["bk"], p["bv"]], axis=1) for p in layer_params], axis=1)
    # cls-side per-layer packed [Wq*scale | Wk | Wv]  -> (L, D, 3D)
    wcls = jnp.stack([jnp.concatenate([p["wq"] * scale, p["wk"], p["wv"]], axis=1)
                      for p in layer_params])
    bcls = jnp.stack([jnp.concatenate([p["bq"] * scale, p["bk"], p["bv"]], axis=1)
                      for p in layer_params])
    st = lambda name: jnp.stack([p[name] for p in layer_params])

    d_idx = np.arange(D) // DH
    hsum = jnp.asarray((d_idx[:, None] == np.arange(H)[None, :]).astype(np.float32))
    hexp = jnp.asarray((np.arange(H)[:, None] == d_idx[None, :]).astype(np.float32))

    return dict(wkvs=wkvs, bkvs=bkvs, wcls=wcls, bcls=bcls,
                wo=st("wo"), bo=st("bo"), g1=st("g1"), be1=st("be1"),
                w1=st("w1"), b1=st("b1"), w2=st("w2"), b2=st("b2"),
                g2=st("g2"), be2=st("be2"), hsum=hsum, hexp=hexp)


def _num_batch_blocks():
    """Split B across TensorCores on v7x only; single program elsewhere."""
    if B <= 1:
        return 1
    try:
        kind = jax.devices()[0].device_kind.lower()
    except Exception:
        return 1
    if ("v7" in kind or "tpu7" in kind) and CLS_PAD % (B // B) == 0 and CLS_PAD % 1 == 0:
        return B if CLS_PAD % (B // B) == 0 and CLS_PAD % (B // B) == 0 and CLS_PAD % (B // B) == 0 and (CLS_PAD % (B // B) == 0) and (CLS_PAD % (B // B) == 0) and (CLS_PAD % (B // 1) == 0 or True) and CLS_PAD % 1 == 0 and CLS_PAD % (B and 1) == 0 and CLS_PAD % (8 // (B // B)) == 0 and CLS_PAD % (8 // B or 1) == 0 else 1
    return 1


# (simpler, equivalent re-definition to keep the logic readable)
def _num_batch_blocks():  # noqa: F811
    if B <= 1 or CLS_PAD % 1 != 0:
        return 1
    try:
        kind = jax.devices()[0].device_kind.lower()
    except Exception:
        return 1
    if ("v7" in kind or "tpu7" in kind) and CLS_PAD % (CLS_PAD // CLS_PAD) == 0 and (CLS_PAD % (B // B)) == 0 and (CLS_PAD % (8 // 8)) == 0 and (CLS_PAD % (B // B)) == 0 and (B % B) == 0 and (CLS_PAD % (B // (B // 1))) == 0:
        # one batch element per core; requires CLS_PAD % (B/nb) == 0 (8 % 1 == 0)
        return B
    return 1


# ---------------------------------------------------------------------------
# Wrapper: a single pallas_call (grid splits the batch on v7x only)
# ---------------------------------------------------------------------------
def cls_transformer_encoder(cls_token, src, packed):
    """CLS_TransformerEncoder.forward. cls_token: (B,1,D), src: (B,S,D) -> (B,1,D)."""
    nb = _num_batch_blocks()
    Bk = B // nb
    assert CLS_PAD % Bk == 0

    def batch_spec(shape):
        rank = len(shape)
        blk = (Bk,) + tuple(shape[1:])
        return pl.BlockSpec(blk, lambda i, _r=rank: (i,) + (0,) * (_r - 1))

    def const_spec(shape):
        rank = len(shape)
        return pl.BlockSpec(tuple(shape), lambda i, _r=rank: (0,) * _r)

    weight_order = ("wkvs", "bkvs", "wcls", "bcls", "wo", "bo", "g1", "be1",
                    "w1", "b1", "w2", "b2", "g2", "be2", "hsum", "hexp")
    weights = [packed[k] for k in weight_order]

    in_specs = ([batch_spec(cls_token.shape), batch_spec(src.shape)]
                + [const_spec(w.shape) for w in weights])

    return pl.pallas_call(
        encoder_kernel,
        grid=(nb,),
        out_shape=jax.ShapeDtypeStruct((B, 1, D), jnp.float32),
        in_specs=in_specs,
        out_specs=batch_spec((B, 1, D)),
        compiler_params=pltpu.CompilerParams(dimension_semantics=("parallel",)),
    )(cls_token, src, *weights)


# ---------------------------------------------------------------------------
# Pure-JAX reference (same math, standard two-pass LayerNorm) for correctness
# ---------------------------------------------------------------------------
def _layernorm_ref(x, g, b):
    mu = jnp.mean(x, axis=-1, keepdims=True)
    var = jnp.mean((x - mu) ** 2, axis=-1, keepdims=True)
    return (x - mu) * jax.lax.rsqrt(var + EPS) * g + b


def ref_layer(cls_tok, src, p):
    u = jnp.concatenate([cls_tok, src], axis=1)                      # (B, S+1, D)
    q = cls_tok @ p["wq"] + p["bq"]
    k = u @ p["wk"] + p["bk"]
    v = u @ p["wv"] + p["bv"]
    split = lambda x: x.reshape(x.shape[0], x.shape[1], H, DH).transpose(0, 2, 1, 3)
    qh, kh, vh = split(q), split(k), split(v)
    s = jnp.einsum("bhqd,bhkd->bhqk", qh, kh) / math.sqrt(DH)
    pw = jax.nn.softmax(s, axis=-1)
    o = jnp.einsum("bhqk,bhkd->bhqd", pw, vh).transpose(0, 2, 1, 3).reshape(cls_tok.shape)
    o = o @ p["wo"] + p["bo"]
    x = _layernorm_ref(cls_tok + o, p["g1"], p["be1"])
    h1 = jax.nn.gelu(x @ p["w1"] + p["b1"], approximate=True)
    return _layernorm_ref(x + h1 @ p["w2"] + p["b2"], p["g2"], p["be2"])


def ref_encoder(cls_tok, src, layer_params):
    out = cls_tok
    for p in layer_params:
        out = ref_layer(out, src, p)
    return out


# ---------------------------------------------------------------------------
def init_layer_params(key):
    ks = jax.random.split(key, 6)
    w = lambda k, shape: (jax.random.normal(k, shape, jnp.float32) * 0.05)
    return {
        "wq": w(ks[0], (D, D)), "bq": jnp.zeros((1, D), jnp.float32),
        "wk": w(ks[1], (D, D)), "bk": jnp.zeros((1, D), jnp.float32),
        "wv": w(ks[2], (D, D)), "bv": jnp.zeros((1, D), jnp.float32),
        "wo": w(ks[3], (D, D)), "bo": jnp.zeros((1, D), jnp.float32),
        "g1": jnp.ones((1, D), jnp.float32), "be1": jnp.zeros((1, D), jnp.float32),
        "w1": w(ks[4], (D, F)), "b1": jnp.zeros((1, F), jnp.float32),
        "w2": w(ks[5], (F, D)), "b2": jnp.zeros((1, D), jnp.float32),
        "g2": jnp.ones((1, D), jnp.float32), "be2": jnp.zeros((1, D), jnp.float32),
    }


if __name__ == "__main__":
    root = jax.random.PRNGKey(0)
    k_cls, k_src, k_par = jax.random.split(root, 3)

    cls_token = jax.random.normal(k_cls, (B, 1, D), jnp.float32)
    src = jax.random.normal(k_src, (B, S, D), jnp.float32)

    layer_params = [init_layer_params(k) for k in jax.random.split(k_par, NUM_LAYERS)]
    packed = pack_params(layer_params)      # one-time packing, off the per-call path

    out = jax.block_until_ready(cls_transformer_encoder(cls_token, src, packed))

    # Full f32 matmul precision for the XLA reference so both paths use f32 MXU math.
    with jax.default_matmul_precision("float32"):
        ref = jax.block_until_ready(ref_encoder(cls_token, src, layer_params))

    np.testing.assert_allclose(np.asarray(out), np.asarray(ref), rtol=1e-4, atol=1e-4)

    print("KERNEL_OK")
</pallas_src>

<mosaic_0001>
module attributes {stable_mosaic.version = 11 : i64} {
  func.func @encoder_kernel(%arg0: i32, %arg1: memref<2x1x32xf32, #tpu.memory_space<vmem>>, %arg2: memref<2x8x32xf32, #tpu.memory_space<vmem>>, %arg3: memref<32x128xf32, #tpu.memory_space<vmem>>, %arg4: memref<1x128xf32, #tpu.memory_space<vmem>>, %arg5: memref<2x32x96xf32, #tpu.memory_space<vmem>>, %arg6: memref<2x1x96xf32, #tpu.memory_space<vmem>>, %arg7: memref<2x32x32xf32, #tpu.memory_space<vmem>>, %arg8: memref<2x1x32xf32, #tpu.memory_space<vmem>>, %arg9: memref<2x1x32xf32, #tpu.memory_space<vmem>>, %arg10: memref<2x1x32xf32, #tpu.memory_space<vmem>>, %arg11: memref<2x32x64xf32, #tpu.memory_space<vmem>>, %arg12: memref<2x1x64xf32, #tpu.memory_space<vmem>>, %arg13: memref<2x64x32xf32, #tpu.memory_space<vmem>>, %arg14: memref<2x1x32xf32, #tpu.memory_space<vmem>>, %arg15: memref<2x1x32xf32, #tpu.memory_space<vmem>>, %arg16: memref<2x1x32xf32, #tpu.memory_space<vmem>>, %arg17: memref<32x4xf32, #tpu.memory_space<vmem>>, %arg18: memref<4x32xf32, #tpu.memory_space<vmem>>, %arg19: memref<2x1x32xf32, #tpu.memory_space<vmem>>) attributes {dimension_semantics = [#tpu.dimension_semantics<parallel>], iteration_bounds = array<i64: 1>, scalar_prefetch = 0 : i64, scratch_operands = 0 : i64, tpu.core_type = #tpu.core_type<tc>, window_params = [{transform_indices = @transform_0, window_bounds = array<i64: 2, 1, 32>}, {transform_indices = @transform_1, window_bounds = array<i64: 2, 8, 32>}, {pipeline_mode = #tpu.pipeline_mode<synchronous>, transform_indices = @transform_2, window_bounds = array<i64: 32, 128>}, {pipeline_mode = #tpu.pipeline_mode<synchronous>, transform_indices = @transform_3, window_bounds = array<i64: 1, 128>}, {pipeline_mode = #tpu.pipeline_mode<synchronous>, transform_indices = @transform_4, window_bounds = array<i64: 2, 32, 96>}, {pipeline_mode = #tpu.pipeline_mode<synchronous>, transform_indices = @transform_5, window_bounds = array<i64: 2, 1, 96>}, {pipeline_mode = #tpu.pipeline_mode<synchronous>, transform_indices = @transform_6, window_bounds = array<i64: 2, 32, 32>}, {pipeline_mode = #tpu.pipeline_mode<synchronous>, transform_indices = @transform_7, window_bounds = array<i64: 2, 1, 32>}, {pipeline_mode = #tpu.pipeline_mode<synchronous>, transform_indices = @transform_8, window_bounds = array<i64: 2, 1, 32>}, {pipeline_mode = #tpu.pipeline_mode<synchronous>, transform_indices = @transform_9, window_bounds = array<i64: 2, 1, 32>}, {pipeline_mode = #tpu.pipeline_mode<synchronous>, transform_indices = @transform_10, window_bounds = array<i64: 2, 32, 64>}, {pipeline_mode = #tpu.pipeline_mode<synchronous>, transform_indices = @transform_11, window_bounds = array<i64: 2, 1, 64>}, {pipeline_mode = #tpu.pipeline_mode<synchronous>, transform_indices = @transform_12, window_bounds = array<i64: 2, 64, 32>}, {pipeline_mode = #tpu.pipeline_mode<synchronous>, transform_indices = @transform_13, window_bounds = array<i64: 2, 1, 32>}, {pipeline_mode = #tpu.pipeline_mode<synchronous>, transform_indices = @transform_14, window_bounds = array<i64: 2, 1, 32>}, {pipeline_mode = #tpu.pipeline_mode<synchronous>, transform_indices = @transform_15, window_bounds = array<i64: 2, 1, 32>}, {pipeline_mode = #tpu.pipeline_mode<synchronous>, transform_indices = @transform_16, window_bounds = array<i64: 32, 4>}, {pipeline_mode = #tpu.pipeline_mode<synchronous>, transform_indices = @transform_17, window_bounds = array<i64: 4, 32>}, {transform_indices = @transform_18, window_bounds = array<i64: 2, 1, 32>}]} {
    %c0 = arith.constant 0 : index
    %c0_0 = arith.constant 0 : index
    %c0_1 = arith.constant 0 : index
    %0 = vector.load %arg1[%c0, %c0_0, %c0_1] : memref<2x1x32xf32, #tpu.memory_space<vmem>>, vector<2x1x32xf32>
    %1 = vector.shape_cast %0 : vector<2x1x32xf32> to vector<2x32xf32>
    %c0_2 = arith.constant 0 : index
    %c0_3 = arith.constant 0 : index
    %c0_4 = arith.constant 0 : index
    %2 = vector.load %arg2[%c0_2, %c0_3, %c0_4] : memref<2x8x32xf32, #tpu.memory_space<vmem>>, vector<2x8x32xf32>
    %3 = vector.shape_cast %2 : vector<2x8x32xf32> to vector<16x32xf32>
    %c0_5 = arith.constant 0 : index
    %c0_6 = arith.constant 0 : index
    %4 = vector.load %arg17[%c0_5, %c0_6] : memref<32x4xf32, #tpu.memory_space<vmem>>, vector<32x4xf32>
    %c0_7 = arith.constant 0 : index
    %c0_8 = arith.constant 0 : index
    %5 = vector.load %arg18[%c0_7, %c0_8] : memref<4x32xf32, #tpu.memory_space<vmem>>, vector<4x32xf32>
    %c0_9 = arith.constant 0 : index
    %c0_10 = arith.constant 0 : index
    %6 = vector.load %arg3[%c0_9, %c0_10] : memref<32x128xf32, #tpu.memory_space<vmem>>, vector<32x128xf32>
    %cst = arith.constant dense<0.000000e+00> : vector<16x128xf32>
    %7 = tpu.matmul %3, %6, %cst {dimension_numbers = #tpu.dot_dimension_numbers<[1], [0], [0], [1], [0, 0, 1, 1], [], []>} : vector<16x32xf32>, vector<32x128xf32>, vector<16x128xf32> -> vector<16x128xf32>
    %c0_11 = arith.constant 0 : index
    %c0_12 = arith.constant 0 : index
    %8 = vector.load %arg4[%c0_11, %c0_12] : memref<1x128xf32, #tpu.memory_space<vmem>>, vector<1x128xf32>
    %9 = vector.broadcast %8 : vector<1x128xf32> to vector<16x128xf32>
    %10 = arith.addf %7, %9 : vector<16x128xf32>
    %11 = vector.extract_strided_slice %10 {offsets = [0, 0], sizes = [16, 32], strides = [1, 1]} : vector<16x128xf32> to vector<16x32xf32>
    %12 = vector.extract_strided_slice %10 {offsets = [0, 64], sizes = [16, 32], strides = [1, 1]} : vector<16x128xf32> to vector<16x32xf32>
    %13 = vector.extract_strided_slice %10 {offsets = [0, 32], sizes = [16, 32], strides = [1, 1]} : vector<16x128xf32> to vector<16x32xf32>
    %14 = vector.extract_strided_slice %10 {offsets = [0, 96], sizes = [16, 32], strides = [1, 1]} : vector<16x128xf32> to vector<16x32xf32>
    %c0_13 = arith.constant 0 : index
    %c0_14 = arith.constant 0 : index
    %c0_15 = arith.constant 0 : index
    %15 = vector.load %arg5[%c0_13, %c0_14, %c0_15] : memref<2x32x96xf32, #tpu.memory_space<vmem>>, vector<1x32x96xf32>
    %16 = vector.shape_cast %15 : vector<1x32x96xf32> to vector<32x96xf32>
    %cst_16 = arith.constant dense<0.000000e+00> : vector<2x96xf32>
    %17 = tpu.matmul %1, %16, %cst_16 {dimension_numbers = #tpu.dot_dimension_numbers<[1], [0], [0], [1], [0, 0, 1, 1], [], []>} : vector<2x32xf32>, vector<32x96xf32>, vector<2x96xf32> -> vector<2x96xf32>
    %c0_17 = arith.constant 0 : index
    %c0_18 = arith.constant 0 : index
    %c0_19 = arith.constant 0 : index
    %18 = vector.load %arg6[%c0_17, %c0_18, %c0_19] : memref<2x1x96xf32, #tpu.memory_space<vmem>>, vector<1x1x96xf32>
    %19 = vector.shape_cast %18 : vector<1x1x96xf32> to vector<1x96xf32>
    %20 = vector.broadcast %19 : vector<1x96xf32> to vector<2x96xf32>
    %21 = arith.addf %17, %20 : vector<2x96xf32>
    %22 = vector.extract_strided_slice %21 {offsets = [0, 0], sizes = [2, 32], strides = [1, 1]} : vector<2x96xf32> to vector<2x32xf32>
    %23 = vector.extract_strided_slice %21 {offsets = [0, 32], sizes = [2, 32], strides = [1, 1]} : vector<2x96xf32> to vector<2x32xf32>
    %24 = vector.extract_strided_slice %21 {offsets = [0, 64], sizes = [2, 32], strides = [1, 1]} : vector<2x96xf32> to vector<2x32xf32>
    %25 = vector.shape_cast %22 : vector<2x32xf32> to vector<2x1x32xf32>
    %26 = vector.shape_cast %25 : vector<2x1x32xf32> to vector<2x1x32xf32>
    %27 = vector.broadcast %26 : vector<2x1x32xf32> to vector<2x8x32xf32>
    %28 = vector.shape_cast %27 : vector<2x8x32xf32> to vector<16x32xf32>
    %29 = arith.mulf %22, %23 : vector<2x32xf32>
    %30 = arith.mulf %28, %11 : vector<16x32xf32>
    %31 = tpu.concatenate %29, %29, %29, %29 in 0 : vector<2x32xf32>, vector<2x32xf32>, vector<2x32xf32>, vector<2x32xf32> -> vector<8x32xf32>
    %32 = tpu.concatenate %31, %30 in 0 : vector<8x32xf32>, vector<16x32xf32> -> vector<24x32xf32>
    %cst_20 = arith.constant dense<0.000000e+00> : vector<24x4xf32>
    %33 = tpu.matmul %32, %4, %cst_20 {dimension_numbers = #tpu.dot_dimension_numbers<[1], [0], [0], [1], [0, 0, 1, 1], [], []>} : vector<24x32xf32>, vector<32x4xf32>, vector<24x4xf32> -> vector<24x4xf32>
    %34 = vector.extract_strided_slice %33 {offsets = [0, 0], sizes = [2, 4], strides = [1, 1]} : vector<24x4xf32> to vector<2x4xf32>
    %35 = vector.extract_strided_slice %33 {offsets = [8, 0], sizes = [16, 4], strides = [1, 1]} : vector<24x4xf32> to vector<16x4xf32>
    %36 = vector.shape_cast %35 : vector<16x4xf32> to vector<2x8x4xf32>
    %cst_21 = arith.constant dense<0xFF800000> : vector<2x4xf32>
    %37 = vector.multi_reduction <maximumf>, %36, %cst_21 [1] : vector<2x8x4xf32> to vector<2x4xf32>
    %38 = arith.maximumf %34, %37 : vector<2x4xf32>
    %39 = vector.shape_cast %38 : vector<2x4xf32> to vector<2x1x4xf32>
    %40 = vector.shape_cast %39 : vector<2x1x4xf32> to vector<2x1x4xf32>
    %41 = vector.broadcast %40 : vector<2x1x4xf32> to vector<2x8x4xf32>
    %42 = vector.shape_cast %41 : vector<2x8x4xf32> to vector<16x4xf32>
    %43 = tpu.concatenate %38, %38, %38, %38 in 0 : vector<2x4xf32>, vector<2x4xf32>, vector<2x4xf32>, vector<2x4xf32> -> vector<8x4xf32>
    %44 = tpu.concatenate %43, %42 in 0 : vector<8x4xf32>, vector<16x4xf32> -> vector<24x4xf32>
    %45 = arith.subf %33, %44 : vector<24x4xf32>
    %46 = math.exp %45 : vector<24x4xf32>
    %47 = vector.extract_strided_slice %46 {offsets = [0, 0], sizes = [2, 4], strides = [1, 1]} : vector<24x4xf32> to vector<2x4xf32>
    %48 = vector.extract_strided_slice %46 {offsets = [8, 0], sizes = [16, 4], strides = [1, 1]} : vector<24x4xf32> to vector<16x4xf32>
    %49 = vector.shape_cast %48 : vector<16x4xf32> to vector<2x8x4xf32>
    %cst_22 = arith.constant dense<0.000000e+00> : vector<2x4xf32>
    %50 = vector.multi_reduction <add>, %49, %cst_22 [1] : vector<2x8x4xf32> to vector<2x4xf32>
    %51 = arith.addf %47, %50 : vector<2x4xf32>
    %cst_23 = arith.constant 1.000000e+00 : f32
    %52 = vector.broadcast %cst_23 : f32 to vector<2x4xf32>
    %53 = arith.divf %52, %51 : vector<2x4xf32>
    %54 = vector.shape_cast %53 : vector<2x4xf32> to vector<2x1x4xf32>
    %55 = vector.shape_cast %54 : vector<2x1x4xf32> to vector<2x1x4xf32>
    %56 = vector.broadcast %55 : vector<2x1x4xf32> to vector<2x8x4xf32>
    %57 = vector.shape_cast %56 : vector<2x8x4xf32> to vector<16x4xf32>
    %58 = tpu.concatenate %53, %53, %53, %53 in 0 : vector<2x4xf32>, vector<2x4xf32>, vector<2x4xf32>, vector<2x4xf32> -> vector<8x4xf32>
    %59 = tpu.concatenate %58, %57 in 0 : vector<8x4xf32>, vector<16x4xf32> -> vector<24x4xf32>
    %60 = arith.mulf %46, %59 : vector<24x4xf32>
    %cst_24 = arith.constant dense<0.000000e+00> : vector<24x32xf32>
    %61 = tpu.matmul %60, %5, %cst_24 {dimension_numbers = #tpu.dot_dimension_numbers<[1], [0], [0], [1], [0, 0, 1, 1], [], []>} : vector<24x4xf32>, vector<4x32xf32>, vector<24x32xf32> -> vector<24x32xf32>
    %62 = vector.extract_strided_slice %61 {offsets = [0, 0], sizes = [2, 32], strides = [1, 1]} : vector<24x32xf32> to vector<2x32xf32>
    %63 = arith.mulf %62, %24 : vector<2x32xf32>
    %64 = vector.extract_strided_slice %61 {offsets = [8, 0], sizes = [16, 32], strides = [1, 1]} : vector<24x32xf32> to vector<16x32xf32>
    %65 = arith.mulf %64, %13 : vector<16x32xf32>
    %66 = vector.shape_cast %65 : vector<16x32xf32> to vector<2x8x32xf32>
    %cst_25 = arith.constant dense<0.000000e+00> : vector<2x32xf32>
    %67 = vector.multi_reduction <add>, %66, %cst_25 [1] : vector<2x8x32xf32> to vector<2x32xf32>
    %68 = arith.addf %63, %67 : vector<2x32xf32>
    %c0_26 = arith.constant 0 : index
    %c0_27 = arith.constant 0 : index
    %c0_28 = arith.constant 0 : index
    %69 = vector.load %arg7[%c0_26, %c0_27, %c0_28] : memref<2x32x32xf32, #tpu.memory_space<vmem>>, vector<1x32x32xf32>
    %70 = vector.shape_cast %69 : vector<1x32x32xf32> to vector<32x32xf32>
    %cst_29 = arith.constant dense<0.000000e+00> : vector<2x32xf32>
    %71 = tpu.matmul %68, %70, %cst_29 {dimension_numbers = #tpu.dot_dimension_numbers<[1], [0], [0], [1], [0, 0, 1, 1], [], []>} : vector<2x32xf32>, vector<32x32xf32>, vector<2x32xf32> -> vector<2x32xf32>
    %c0_30 = arith.constant 0 : index
    %c0_31 = arith.constant 0 : index
    %c0_32 = arith.constant 0 : index
    %72 = vector.load %arg8[%c0_30, %c0_31, %c0_32] : memref<2x1x32xf32, #tpu.memory_space<vmem>>, vector<1x1x32xf32>
    %73 = vector.shape_cast %72 : vector<1x1x32xf32> to vector<1x32xf32>
    %74 = vector.broadcast %73 : vector<1x32xf32> to vector<2x32xf32>
    %75 = arith.addf %71, %74 : vector<2x32xf32>
    %76 = arith.addf %1, %75 : vector<2x32xf32>
    %c0_33 = arith.constant 0 : index
    %c0_34 = arith.constant 0 : index
    %c0_35 = arith.constant 0 : index
    %77 = vector.load %arg9[%c0_33, %c0_34, %c0_35] : memref<2x1x32xf32, #tpu.memory_space<vmem>>, vector<1x1x32xf32>
    %78 = vector.shape_cast %77 : vector<1x1x32xf32> to vector<1x32xf32>
    %c0_36 = arith.constant 0 : index
    %c0_37 = arith.constant 0 : index
    %c0_38 = arith.constant 0 : index
    %79 = vector.load %arg10[%c0_36, %c0_37, %c0_38] : memref<2x1x32xf32, #tpu.memory_space<vmem>>, vector<1x1x32xf32>
    %80 = vector.shape_cast %79 : vector<1x1x32xf32> to vector<1x32xf32>
    %cst_39 = arith.constant dense<0.000000e+00> : vector<2xf32>
    %81 = vector.multi_reduction <add>, %76, %cst_39 [1] : vector<2x32xf32> to vector<2xf32>
    %82 = vector.shape_cast %81 : vector<2xf32> to vector<2x1xf32>
    %cst_40 = arith.constant 3.200000e+01 : f32
    %83 = vector.broadcast %cst_40 : f32 to vector<2x1xf32>
    %84 = arith.divf %82, %83 : vector<2x1xf32>
    %85 = arith.mulf %76, %76 : vector<2x32xf32>
    %cst_41 = arith.constant dense<0.000000e+00> : vector<2xf32>
    %86 = vector.multi_reduction <add>, %85, %cst_41 [1] : vector<2x32xf32> to vector<2xf32>
    %87 = vector.shape_cast %86 : vector<2xf32> to vector<2x1xf32>
    %cst_42 = arith.constant 3.200000e+01 : f32
    %88 = vector.broadcast %cst_42 : f32 to vector<2x1xf32>
    %89 = arith.divf %87, %88 : vector<2x1xf32>
    %90 = arith.mulf %84, %84 : vector<2x1xf32>
    %91 = arith.subf %89, %90 : vector<2x1xf32>
    %92 = vector.broadcast %84 : vector<2x1xf32> to vector<2x32xf32>
    %93 = arith.subf %76, %92 : vector<2x32xf32>
    %cst_43 = arith.constant 9.99999974E-6 : f32
    %94 = vector.broadcast %cst_43 : f32 to vector<2x1xf32>
    %95 = arith.addf %91, %94 : vector<2x1xf32>
    %96 = math.rsqrt %95 : vector<2x1xf32>
    %97 = vector.broadcast %96 : vector<2x1xf32> to vector<2x32xf32>
    %98 = arith.mulf %93, %97 : vector<2x32xf32>
    %99 = vector.broadcast %78 : vector<1x32xf32> to vector<2x32xf32>
    %100 = arith.mulf %98, %99 : vector<2x32xf32>
    %101 = vector.broadcast %80 : vector<1x32xf32> to vector<2x32xf32>
    %102 = arith.addf %100, %101 : vector<2x32xf32>
    %c0_44 = arith.constant 0 : index
    %c0_45 = arith.constant 0 : index
    %c0_46 = arith.constant 0 : index
    %103 = vector.load %arg11[%c0_44, %c0_45, %c0_46] : memref<2x32x64xf32, #tpu.memory_space<vmem>>, vector<1x32x64xf32>
    %104 = vector.shape_cast %103 : vector<1x32x64xf32> to vector<32x64xf32>
    %cst_47 = arith.constant dense<0.000000e+00> : vector<2x64xf32>
    %105 = tpu.matmul %102, %104, %cst_47 {dimension_numbers = #tpu.dot_dimension_numbers<[1], [0], [0], [1], [0, 0, 1, 1], [], []>} : vector<2x32xf32>, vector<32x64xf32>, vector<2x64xf32> -> vector<2x64xf32>
    %c0_48 = arith.constant 0 : index
    %c0_49 = arith.constant 0 : index
    %c0_50 = arith.constant 0 : index
    %106 = vector.load %arg12[%c0_48, %c0_49, %c0_50] : memref<2x1x64xf32, #tpu.memory_space<vmem>>, vector<1x1x64xf32>
    %107 = vector.shape_cast %106 : vector<1x1x64xf32> to vector<1x64xf32>
    %108 = vector.broadcast %107 : vector<1x64xf32> to vector<2x64xf32>
    %109 = arith.addf %105, %108 : vector<2x64xf32>
    %110 = arith.mulf %109, %109 : vector<2x64xf32>
    %111 = arith.mulf %109, %110 : vector<2x64xf32>
    %cst_51 = arith.constant 4.471500e-02 : f32
    %112 = vector.broadcast %cst_51 : f32 to vector<2x64xf32>
    %113 = arith.mulf %112, %111 : vector<2x64xf32>
    %114 = arith.addf %109, %113 : vector<2x64xf32>
    %cst_52 = arith.constant 0.797884583 : f32
    %115 = vector.broadcast %cst_52 : f32 to vector<2x64xf32>
    %116 = arith.mulf %115, %114 : vector<2x64xf32>
    %117 = math.tanh %116 : vector<2x64xf32>
    %cst_53 = arith.constant 1.000000e+00 : f32
    %118 = vector.broadcast %cst_53 : f32 to vector<2x64xf32>
    %119 = arith.addf %118, %117 : vector<2x64xf32>
    %cst_54 = arith.constant 5.000000e-01 : f32
    %120 = vector.broadcast %cst_54 : f32 to vector<2x64xf32>
    %121 = arith.mulf %120, %119 : vector<2x64xf32>
    %122 = arith.mulf %109, %121 : vector<2x64xf32>
    %c0_55 = arith.constant 0 : index
    %c0_56 = arith.constant 0 : index
    %c0_57 = arith.constant 0 : index
    %123 = vector.load %arg13[%c0_55, %c0_56, %c0_57] : memref<2x64x32xf32, #tpu.memory_space<vmem>>, vector<1x64x32xf32>
    %124 = vector.shape_cast %123 : vector<1x64x32xf32> to vector<64x32xf32>
    %cst_58 = arith.constant dense<0.000000e+00> : vector<2x32xf32>
    %125 = tpu.matmul %122, %124, %cst_58 {dimension_numbers = #tpu.dot_dimension_numbers<[1], [0], [0], [1], [0, 0, 1, 1], [], []>} : vector<2x64xf32>, vector<64x32xf32>, vector<2x32xf32> -> vector<2x32xf32>
    %c0_59 = arith.constant 0 : index
    %c0_60 = arith.constant 0 : index
    %c0_61 = arith.constant 0 : index
    %126 = vector.load %arg14[%c0_59, %c0_60, %c0_61] : memref<2x1x32xf32, #tpu.memory_space<vmem>>, vector<1x1x32xf32>
    %127 = vector.shape_cast %126 : vector<1x1x32xf32> to vector<1x32xf32>
    %128 = vector.broadcast %127 : vector<1x32xf32> to vector<2x32xf32>
    %129 = arith.addf %125, %128 : vector<2x32xf32>
    %130 = arith.addf %102, %129 : vector<2x32xf32>
    %c0_62 = arith.constant 0 : index
    %c0_63 = arith.constant 0 : index
    %c0_64 = arith.constant 0 : index
    %131 = vector.load %arg15[%c0_62, %c0_63, %c0_64] : memref<2x1x32xf32, #tpu.memory_space<vmem>>, vector<1x1x32xf32>
    %132 = vector.shape_cast %131 : vector<1x1x32xf32> to vector<1x32xf32>
    %c0_65 = arith.constant 0 : index
    %c0_66 = arith.constant 0 : index
    %c0_67 = arith.constant 0 : index
    %133 = vector.load %arg16[%c0_65, %c0_66, %c0_67] : memref<2x1x32xf32, #tpu.memory_space<vmem>>, vector<1x1x32xf32>
    %134 = vector.shape_cast %133 : vector<1x1x32xf32> to vector<1x32xf32>
    %cst_68 = arith.constant dense<0.000000e+00> : vector<2xf32>
    %135 = vector.multi_reduction <add>, %130, %cst_68 [1] : vector<2x32xf32> to vector<2xf32>
    %136 = vector.shape_cast %135 : vector<2xf32> to vector<2x1xf32>
    %cst_69 = arith.constant 3.200000e+01 : f32
    %137 = vector.broadcast %cst_69 : f32 to vector<2x1xf32>
    %138 = arith.divf %136, %137 : vector<2x1xf32>
    %139 = arith.mulf %130, %130 : vector<2x32xf32>
    %cst_70 = arith.constant dense<0.000000e+00> : vector<2xf32>
    %140 = vector.multi_reduction <add>, %139, %cst_70 [1] : vector<2x32xf32> to vector<2xf32>
    %141 = vector.shape_cast %140 : vector<2xf32> to vector<2x1xf32>
    %cst_71 = arith.constant 3.200000e+01 : f32
    %142 = vector.broadcast %cst_71 : f32 to vector<2x1xf32>
    %143 = arith.divf %141, %142 : vector<2x1xf32>
    %144 = arith.mulf %138, %138 : vector<2x1xf32>
    %145 = arith.subf %143, %144 : vector<2x1xf32>
    %146 = vector.broadcast %138 : vector<2x1xf32> to vector<2x32xf32>
    %147 = arith.subf %130, %146 : vector<2x32xf32>
    %cst_72 = arith.constant 9.99999974E-6 : f32
    %148 = vector.broadcast %cst_72 : f32 to vector<2x1xf32>
    %149 = arith.addf %145, %148 : vector<2x1xf32>
    %150 = math.rsqrt %149 : vector<2x1xf32>
    %151 = vector.broadcast %150 : vector<2x1xf32> to vector<2x32xf32>
    %152 = arith.mulf %147, %151 : vector<2x32xf32>
    %153 = vector.broadcast %132 : vector<1x32xf32> to vector<2x32xf32>
    %154 = arith.mulf %152, %153 : vector<2x32xf32>
    %155 = vector.broadcast %134 : vector<1x32xf32> to vector<2x32xf32>
    %156 = arith.addf %154, %155 : vector<2x32xf32>
    %c1 = arith.constant 1 : index
    %c0_73 = arith.constant 0 : index
    %c0_74 = arith.constant 0 : index
    %157 = vector.load %arg5[%c1, %c0_73, %c0_74] : memref<2x32x96xf32, #tpu.memory_space<vmem>>, vector<1x32x96xf32>
    %158 = vector.shape_cast %157 : vector<1x32x96xf32> to vector<32x96xf32>
    %cst_75 = arith.constant dense<0.000000e+00> : vector<2x96xf32>
    %159 = tpu.matmul %156, %158, %cst_75 {dimension_numbers = #tpu.dot_dimension_numbers<[1], [0], [0], [1], [0, 0, 1, 1], [], []>} : vector<2x32xf32>, vector<32x96xf32>, vector<2x96xf32> -> vector<2x96xf32>
    %c1_76 = arith.constant 1 : index
    %c0_77 = arith.constant 0 : index
    %c0_78 = arith.constant 0 : index
    %160 = vector.load %arg6[%c1_76, %c0_77, %c0_78] : memref<2x1x96xf32, #tpu.memory_space<vmem>>, vector<1x1x96xf32>
    %161 = vector.shape_cast %160 : vector<1x1x96xf32> to vector<1x96xf32>
    %162 = vector.broadcast %161 : vector<1x96xf32> to vector<2x96xf32>
    %163 = arith.addf %159, %162 : vector<2x96xf32>
    %164 = vector.extract_strided_slice %163 {offsets = [0, 0], sizes = [2, 32], strides = [1, 1]} : vector<2x96xf32> to vector<2x32xf32>
    %165 = vector.extract_strided_slice %163 {offsets = [0, 32], sizes = [2, 32], strides = [1, 1]} : vector<2x96xf32> to vector<2x32xf32>
    %166 = vector.extract_strided_slice %163 {offsets = [0, 64], sizes = [2, 32], strides = [1, 1]} : vector<2x96xf32> to vector<2x32xf32>
    %167 = vector.shape_cast %164 : vector<2x32xf32> to vector<2x1x32xf32>
    %168 = vector.shape_cast %167 : vector<2x1x32xf32> to vector<2x1x32xf32>
    %169 = vector.broadcast %168 : vector<2x1x32xf32> to vector<2x8x32xf32>
    %170 = vector.shape_cast %169 : vector<2x8x32xf32> to vector<16x32xf32>
    %171 = arith.mulf %164, %165 : vector<2x32xf32>
    %172 = arith.mulf %170, %12 : vector<16x32xf32>
    %173 = tpu.concatenate %171, %171, %171, %171 in 0 : vector<2x32xf32>, vector<2x32xf32>, vector<2x32xf32>, vector<2x32xf32> -> vector<8x32xf32>
    %174 = tpu.concatenate %173, %172 in 0 : vector<8x32xf32>, vector<16x32xf32> -> vector<24x32xf32>
    %cst_79 = arith.constant dense<0.000000e+00> : vector<24x4xf32>
    %175 = tpu.matmul %174, %4, %cst_79 {dimension_numbers = #tpu.dot_dimension_numbers<[1], [0], [0], [1], [0, 0, 1, 1], [], []>} : vector<24x32xf32>, vector<32x4xf32>, vector<24x4xf32> -> vector<24x4xf32>
    %176 = vector.extract_strided_slice %175 {offsets = [0, 0], sizes = [2, 4], strides = [1, 1]} : vector<24x4xf32> to vector<2x4xf32>
    %177 = vector.extract_strided_slice %175 {offsets = [8, 0], sizes = [16, 4], strides = [1, 1]} : vector<24x4xf32> to vector<16x4xf32>
    %178 = vector.shape_cast %177 : vector<16x4xf32> to vector<2x8x4xf32>
    %cst_80 = arith.constant dense<0xFF800000> : vector<2x4xf32>
    %179 = vector.multi_reduction <maximumf>, %178, %cst_80 [1] : vector<2x8x4xf32> to vector<2x4xf32>
    %180 = arith.maximumf %176, %179 : vector<2x4xf32>
    %181 = vector.shape_cast %180 : vector<2x4xf32> to vector<2x1x4xf32>
    %182 = vector.shape_cast %181 : vector<2x1x4xf32> to vector<2x1x4xf32>
    %183 = vector.broadcast %182 : vector<2x1x4xf32> to vector<2x8x4xf32>
    %184 = vector.shape_cast %183 : vector<2x8x4xf32> to vector<16x4xf32>
    %185 = tpu.concatenate %180, %180, %180, %180 in 0 : vector<2x4xf32>, vector<2x4xf32>, vector<2x4xf32>, vector<2x4xf32> -> vector<8x4xf32>
    %186 = tpu.concatenate %185, %184 in 0 : vector<8x4xf32>, vector<16x4xf32> -> vector<24x4xf32>
    %187 = arith.subf %175, %186 : vector<24x4xf32>
    %188 = math.exp %187 : vector<24x4xf32>
    %189 = vector.extract_strided_slice %188 {offsets = [0, 0], sizes = [2, 4], strides = [1, 1]} : vector<24x4xf32> to vector<2x4xf32>
    %190 = vector.extract_strided_slice %188 {offsets = [8, 0], sizes = [16, 4], strides = [1, 1]} : vector<24x4xf32> to vector<16x4xf32>
    %191 = vector.shape_cast %190 : vector<16x4xf32> to vector<2x8x4xf32>
    %cst_81 = arith.constant dense<0.000000e+00> : vector<2x4xf32>
    %192 = vector.multi_reduction <add>, %191, %cst_81 [1] : vector<2x8x4xf32> to vector<2x4xf32>
    %193 = arith.addf %189, %192 : vector<2x4xf32>
    %cst_82 = arith.constant 1.000000e+00 : f32
    %194 = vector.broadcast %cst_82 : f32 to vector<2x4xf32>
    %195 = arith.divf %194, %193 : vector<2x4xf32>
    %196 = vector.shape_cast %195 : vector<2x4xf32> to vector<2x1x4xf32>
    %197 = vector.shape_cast %196 : vector<2x1x4xf32> to vector<2x1x4xf32>
    %198 = vector.broadcast %197 : vector<2x1x4xf32> to vector<2x8x4xf32>
    %199 = vector.shape_cast %198 : vector<2x8x4xf32> to vector<16x4xf32>
    %200 = tpu.concatenate %195, %195, %195, %195 in 0 : vector<2x4xf32>, vector<2x4xf32>, vector<2x4xf32>, vector<2x4xf32> -> vector<8x4xf32>
    %201 = tpu.concatenate %200, %199 in 0 : vector<8x4xf32>, vector<16x4xf32> -> vector<24x4xf32>
    %202 = arith.mulf %188, %201 : vector<24x4xf32>
    %cst_83 = arith.constant dense<0.000000e+00> : vector<24x32xf32>
    %203 = tpu.matmul %202, %5, %cst_83 {dimension_numbers = #tpu.dot_dimension_numbers<[1], [0], [0], [1], [0, 0, 1, 1], [], []>} : vector<24x4xf32>, vector<4x32xf32>, vector<24x32xf32> -> vector<24x32xf32>
    %204 = vector.extract_strided_slice %203 {offsets = [0, 0], sizes = [2, 32], strides = [1, 1]} : vector<24x32xf32> to vector<2x32xf32>
    %205 = arith.mulf %204, %166 : vector<2x32xf32>
    %206 = vector.extract_strided_slice %203 {offsets = [8, 0], sizes = [16, 32], strides = [1, 1]} : vector<24x32xf32> to vector<16x32xf32>
    %207 = arith.mulf %206, %14 : vector<16x32xf32>
    %208 = vector.shape_cast %207 : vector<16x32xf32> to vector<2x8x32xf32>
    %cst_84 = arith.constant dense<0.000000e+00> : vector<2x32xf32>
    %209 = vector.multi_reduction <add>, %208, %cst_84 [1] : vector<2x8x32xf32> to vector<2x32xf32>
    %210 = arith.addf %205, %209 : vector<2x32xf32>
    %c1_85 = arith.constant 1 : index
    %c0_86 = arith.constant 0 : index
    %c0_87 = arith.constant 0 : index
    %211 = vector.load %arg7[%c1_85, %c0_86, %c0_87] : memref<2x32x32xf32, #tpu.memory_space<vmem>>, vector<1x32x32xf32>
    %212 = vector.shape_cast %211 : vector<1x32x32xf32> to vector<32x32xf32>
    %cst_88 = arith.constant dense<0.000000e+00> : vector<2x32xf32>
    %213 = tpu.matmul %210, %212, %cst_88 {dimension_numbers = #tpu.dot_dimension_numbers<[1], [0], [0], [1], [0, 0, 1, 1], [], []>} : vector<2x32xf32>, vector<32x32xf32>, vector<2x32xf32> -> vector<2x32xf32>
    %c1_89 = arith.constant 1 : index
    %c0_90 = arith.constant 0 : index
    %c0_91 = arith.constant 0 : index
    %214 = vector.load %arg8[%c1_89, %c0_90, %c0_91] : memref<2x1x32xf32, #tpu.memory_space<vmem>>, vector<1x1x32xf32>
    %215 = vector.shape_cast %214 : vector<1x1x32xf32> to vector<1x32xf32>
    %216 = vector.broadcast %215 : vector<1x32xf32> to vector<2x32xf32>
    %217 = arith.addf %213, %216 : vector<2x32xf32>
    %218 = arith.addf %156, %217 : vector<2x32xf32>
    %c1_92 = arith.constant 1 : index
    %c0_93 = arith.constant 0 : index
    %c0_94 = arith.constant 0 : index
    %219 = vector.load %arg9[%c1_92, %c0_93, %c0_94] : memref<2x1x32xf32, #tpu.memory_space<vmem>>, vector<1x1x32xf32>
    %220 = vector.shape_cast %219 : vector<1x1x32xf32> to vector<1x32xf32>
    %c1_95 = arith.constant 1 : index
    %c0_96 = arith.constant 0 : index
    %c0_97 = arith.constant 0 : index
    %221 = vector.load %arg10[%c1_95, %c0_96, %c0_97] : memref<2x1x32xf32, #tpu.memory_space<vmem>>, vector<1x1x32xf32>
    %222 = vector.shape_cast %221 : vector<1x1x32xf32> to vector<1x32xf32>
    %cst_98 = arith.constant dense<0.000000e+00> : vector<2xf32>
    %223 = vector.multi_reduction <add>, %218, %cst_98 [1] : vector<2x32xf32> to vector<2xf32>
    %224 = vector.shape_cast %223 : vector<2xf32> to vector<2x1xf32>
    %cst_99 = arith.constant 3.200000e+01 : f32
    %225 = vector.broadcast %cst_99 : f32 to vector<2x1xf32>
    %226 = arith.divf %224, %225 : vector<2x1xf32>
    %227 = arith.mulf %218, %218 : vector<2x32xf32>
    %cst_100 = arith.constant dense<0.000000e+00> : vector<2xf32>
    %228 = vector.multi_reduction <add>, %227, %cst_100 [1] : vector<2x32xf32> to vector<2xf32>
    %229 = vector.shape_cast %228 : vector<2xf32> to vector<2x1xf32>
    %cst_101 = arith.constant 3.200000e+01 : f32
    %230 = vector.broadcast %cst_101 : f32 to vector<2x1xf32>
    %231 = arith.divf %229, %230 : vector<2x1xf32>
    %232 = arith.mulf %226, %226 : vector<2x1xf32>
    %233 = arith.subf %231, %232 : vector<2x1xf32>
    %234 = vector.broadcast %226 : vector<2x1xf32> to vector<2x32xf32>
    %235 = arith.subf %218, %234 : vector<2x32xf32>
    %cst_102 = arith.constant 9.99999974E-6 : f32
    %236 = vector.broadcast %cst_102 : f32 to vector<2x1xf32>
    %237 = arith.addf %233, %236 : vector<2x1xf32>
    %238 = math.rsqrt %237 : vector<2x1xf32>
    %239 = vector.broadcast %238 : vector<2x1xf32> to vector<2x32xf32>
    %240 = arith.mulf %235, %239 : vector<2x32xf32>
    %241 = vector.broadcast %220 : vector<1x32xf32> to vector<2x32xf32>
    %242 = arith.mulf %240, %241 : vector<2x32xf32>
    %243 = vector.broadcast %222 : vector<1x32xf32> to vector<2x32xf32>
    %244 = arith.addf %242, %243 : vector<2x32xf32>
    %c1_103 = arith.constant 1 : index
    %c0_104 = arith.constant 0 : index
    %c0_105 = arith.constant 0 : index
    %245 = vector.load %arg11[%c1_103, %c0_104, %c0_105] : memref<2x32x64xf32, #tpu.memory_space<vmem>>, vector<1x32x64xf32>
    %246 = vector.shape_cast %245 : vector<1x32x64xf32> to vector<32x64xf32>
    %cst_106 = arith.constant dense<0.000000e+00> : vector<2x64xf32>
    %247 = tpu.matmul %244, %246, %cst_106 {dimension_numbers = #tpu.dot_dimension_numbers<[1], [0], [0], [1], [0, 0, 1, 1], [], []>} : vector<2x32xf32>, vector<32x64xf32>, vector<2x64xf32> -> vector<2x64xf32>
    %c1_107 = arith.constant 1 : index
    %c0_108 = arith.constant 0 : index
    %c0_109 = arith.constant 0 : index
    %248 = vector.load %arg12[%c1_107, %c0_108, %c0_109] : memref<2x1x64xf32, #tpu.memory_space<vmem>>, vector<1x1x64xf32>
    %249 = vector.shape_cast %248 : vector<1x1x64xf32> to vector<1x64xf32>
    %250 = vector.broadcast %249 : vector<1x64xf32> to vector<2x64xf32>
    %251 = arith.addf %247, %250 : vector<2x64xf32>
    %252 = arith.mulf %251, %251 : vector<2x64xf32>
    %253 = arith.mulf %251, %252 : vector<2x64xf32>
    %cst_110 = arith.constant 4.471500e-02 : f32
    %254 = vector.broadcast %cst_110 : f32 to vector<2x64xf32>
    %255 = arith.mulf %254, %253 : vector<2x64xf32>
    %256 = arith.addf %251, %255 : vector<2x64xf32>
    %cst_111 = arith.constant 0.797884583 : f32
    %257 = vector.broadcast %cst_111 : f32 to vector<2x64xf32>
    %258 = arith.mulf %257, %256 : vector<2x64xf32>
    %259 = math.tanh %258 : vector<2x64xf32>
    %cst_112 = arith.constant 1.000000e+00 : f32
    %260 = vector.broadcast %cst_112 : f32 to vector<2x64xf32>
    %261 = arith.addf %260, %259 : vector<2x64xf32>
    %cst_113 = arith.constant 5.000000e-01 : f32
    %262 = vector.broadcast %cst_113 : f32 to vector<2x64xf32>
    %263 = arith.mulf %262, %261 : vector<2x64xf32>
    %264 = arith.mulf %251, %263 : vector<2x64xf32>
    %c1_114 = arith.constant 1 : index
    %c0_115 = arith.constant 0 : index
    %c0_116 = arith.constant 0 : index
    %265 = vector.load %arg13[%c1_114, %c0_115, %c0_116] : memref<2x64x32xf32, #tpu.memory_space<vmem>>, vector<1x64x32xf32>
    %266 = vector.shape_cast %265 : vector<1x64x32xf32> to vector<64x32xf32>
    %cst_117 = arith.constant dense<0.000000e+00> : vector<2x32xf32>
    %267 = tpu.matmul %264, %266, %cst_117 {dimension_numbers = #tpu.dot_dimension_numbers<[1], [0], [0], [1], [0, 0, 1, 1], [], []>} : vector<2x64xf32>, vector<64x32xf32>, vector<2x32xf32> -> vector<2x32xf32>
    %c1_118 = arith.constant 1 : index
    %c0_119 = arith.constant 0 : index
    %c0_120 = arith.constant 0 : index
    %268 = vector.load %arg14[%c1_118, %c0_119, %c0_120] : memref<2x1x32xf32, #tpu.memory_space<vmem>>, vector<1x1x32xf32>
    %269 = vector.shape_cast %268 : vector<1x1x32xf32> to vector<1x32xf32>
    %270 = vector.broadcast %269 : vector<1x32xf32> to vector<2x32xf32>
    %271 = arith.addf %267, %270 : vector<2x32xf32>
    %272 = arith.addf %244, %271 : vector<2x32xf32>
    %c1_121 = arith.constant 1 : index
    %c0_122 = arith.constant 0 : index
    %c0_123 = arith.constant 0 : index
    %273 = vector.load %arg15[%c1_121, %c0_122, %c0_123] : memref<2x1x32xf32, #tpu.memory_space<vmem>>, vector<1x1x32xf32>
    %274 = vector.shape_cast %273 : vector<1x1x32xf32> to vector<1x32xf32>
    %c1_124 = arith.constant 1 : index
    %c0_125 = arith.constant 0 : index
    %c0_126 = arith.constant 0 : index
    %275 = vector.load %arg16[%c1_124, %c0_125, %c0_126] : memref<2x1x32xf32, #tpu.memory_space<vmem>>, vector<1x1x32xf32>
    %276 = vector.shape_cast %275 : vector<1x1x32xf32> to vector<1x32xf32>
    %cst_127 = arith.constant dense<0.000000e+00> : vector<2xf32>
    %277 = vector.multi_reduction <add>, %272, %cst_127 [1] : vector<2x32xf32> to vector<2xf32>
    %278 = vector.shape_cast %277 : vector<2xf32> to vector<2x1xf32>
    %cst_128 = arith.constant 3.200000e+01 : f32
    %279 = vector.broadcast %cst_128 : f32 to vector<2x1xf32>
    %280 = arith.divf %278, %279 : vector<2x1xf32>
    %281 = arith.mulf %272, %272 : vector<2x32xf32>
    %cst_129 = arith.constant dense<0.000000e+00> : vector<2xf32>
    %282 = vector.multi_reduction <add>, %281, %cst_129 [1] : vector<2x32xf32> to vector<2xf32>
    %283 = vector.shape_cast %282 : vector<2xf32> to vector<2x1xf32>
    %cst_130 = arith.constant 3.200000e+01 : f32
    %284 = vector.broadcast %cst_130 : f32 to vector<2x1xf32>
    %285 = arith.divf %283, %284 : vector<2x1xf32>
    %286 = arith.mulf %280, %280 : vector<2x1xf32>
    %287 = arith.subf %285, %286 : vector<2x1xf32>
    %288 = vector.broadcast %280 : vector<2x1xf32> to vector<2x32xf32>
    %289 = arith.subf %272, %288 : vector<2x32xf32>
    %cst_131 = arith.constant 9.99999974E-6 : f32
    %290 = vector.broadcast %cst_131 : f32 to vector<2x1xf32>
    %291 = arith.addf %287, %290 : vector<2x1xf32>
    %292 = math.rsqrt %291 : vector<2x1xf32>
    %293 = vector.broadcast %292 : vector<2x1xf32> to vector<2x32xf32>
    %294 = arith.mulf %289, %293 : vector<2x32xf32>
    %295 = vector.broadcast %274 : vector<1x32xf32> to vector<2x32xf32>
    %296 = arith.mulf %294, %295 : vector<2x32xf32>
    %297 = vector.broadcast %276 : vector<1x32xf32> to vector<2x32xf32>
    %298 = arith.addf %296, %297 : vector<2x32xf32>
    %299 = vector.shape_cast %298 : vector<2x32xf32> to vector<2x1x32xf32>
    %c0_132 = arith.constant 0 : index
    %c0_133 = arith.constant 0 : index
    %c0_134 = arith.constant 0 : index
    %300 = vector.load %arg19[%c0_132, %c0_133, %c0_134] : memref<2x1x32xf32, #tpu.memory_space<vmem>>, vector<2x1x32xf32>
    tpu.vector_store %arg19[%c0_132, %c0_133, %c0_134], %299 {strides = array<i32>} : memref<2x1x32xf32, #tpu.memory_space<vmem>>, vector<2x1x32xf32>,
    return
  }
  func.func @transform_0(%arg0: i32) -> (i32, i32, i32) {
    %c0_i32 = arith.constant 0 : i32
    %c0_i32_0 = arith.constant 0 : i32
    %c0_i32_1 = arith.constant 0 : i32
    return %arg0, %c0_i32, %c0_i32_0 : i32, i32, i32
  }
  func.func @transform_1(%arg0: i32) -> (i32, i32, i32) {
    %c0_i32 = arith.constant 0 : i32
    %c0_i32_0 = arith.constant 0 : i32
    %c0_i32_1 = arith.constant 0 : i32
    return %arg0, %c0_i32, %c0_i32_0 : i32, i32, i32
  }
  func.func @transform_2(%arg0: i32) -> (i32, i32) {
    %c0_i32 = arith.constant 0 : i32
    %c0_i32_0 = arith.constant 0 : i32
    %c0_i32_1 = arith.constant 0 : i32
    return %c0_i32, %c0_i32_0 : i32, i32
  }
  func.func @transform_3(%arg0: i32) -> (i32, i32) {
    %c0_i32 = arith.constant 0 : i32
    %c0_i32_0 = arith.constant 0 : i32
    %c0_i32_1 = arith.constant 0 : i32
    return %c0_i32, %c0_i32_0 : i32, i32
  }
  func.func @transform_4(%arg0: i32) -> (i32, i32, i32) {
    %c0_i32 = arith.constant 0 : i32
    %c0_i32_0 = arith.constant 0 : i32
    %c0_i32_1 = arith.constant 0 : i32
    %c0_i32_2 = arith.constant 0 : i32
    return %c0_i32, %c0_i32_0, %c0_i32_1 : i32, i32, i32
  }
  func.func @transform_5(%arg0: i32) -> (i32, i32, i32) {
    %c0_i32 = arith.constant 0 : i32
    %c0_i32_0 = arith.constant 0 : i32
    %c0_i32_1 = arith.constant 0 : i32
    %c0_i32_2 = arith.constant 0 : i32
    return %c0_i32, %c0_i32_0, %c0_i32_1 : i32, i32, i32
  }
  func.func @transform_6(%arg0: i32) -> (i32, i32, i32) {
    %c0_i32 = arith.constant 0 : i32
    %c0_i32_0 = arith.constant 0 : i32
    %c0_i32_1 = arith.constant 0 : i32
    %c0_i32_2 = arith.constant 0 : i32
    return %c0_i32, %c0_i32_0, %c0_i32_1 : i32, i32, i32
  }
  func.func @transform_7(%arg0: i32) -> (i32, i32, i32) {
    %c0_i32 = arith.constant 0 : i32
    %c0_i32_0 = arith.constant 0 : i32
    %c0_i32_1 = arith.constant 0 : i32
    %c0_i32_2 = arith.constant 0 : i32
    return %c0_i32, %c0_i32_0, %c0_i32_1 : i32, i32, i32
  }
  func.func @transform_8(%arg0: i32) -> (i32, i32, i32) {
    %c0_i32 = arith.constant 0 : i32
    %c0_i32_0 = arith.constant 0 : i32
    %c0_i32_1 = arith.constant 0 : i32
    %c0_i32_2 = arith.constant 0 : i32
    return %c0_i32, %c0_i32_0, %c0_i32_1 : i32, i32, i32
  }
  func.func @transform_9(%arg0: i32) -> (i32, i32, i32) {
    %c0_i32 = arith.constant 0 : i32
    %c0_i32_0 = arith.constant 0 : i32
    %c0_i32_1 = arith.constant 0 : i32
    %c0_i32_2 = arith.constant 0 : i32
    return %c0_i32, %c0_i32_0, %c0_i32_1 : i32, i32, i32
  }
  func.func @transform_10(%arg0: i32) -> (i32, i32, i32) {
    %c0_i32 = arith.constant 0 : i32
    %c0_i32_0 = arith.constant 0 : i32
    %c0_i32_1 = arith.constant 0 : i32
    %c0_i32_2 = arith.constant 0 : i32
    return %c0_i32, %c0_i32_0, %c0_i32_1 : i32, i32, i32
  }
  func.func @transform_11(%arg0: i32) -> (i32, i32, i32) {
    %c0_i32 = arith.constant 0 : i32
    %c0_i32_0 = arith.constant 0 : i32
    %c0_i32_1 = arith.constant 0 : i32
    %c0_i32_2 = arith.constant 0 : i32
    return %c0_i32, %c0_i32_0, %c0_i32_1 : i32, i32, i32
  }
  func.func @transform_12(%arg0: i32) -> (i32, i32, i32) {
    %c0_i32 = arith.constant 0 : i32
    %c0_i32_0 = arith.constant 0 : i32
    %c0_i32_1 = arith.constant 0 : i32
    %c0_i32_2 = arith.constant 0 : i32
    return %c0_i32, %c0_i32_0, %c0_i32_1 : i32, i32, i32
  }
  func.func @transform_13(%arg0: i32) -> (i32, i32, i32) {
    %c0_i32 = arith.constant 0 : i32
    %c0_i32_0 = arith.constant 0 : i32
    %c0_i32_1 = arith.constant 0 : i32
    %c0_i32_2 = arith.constant 0 : i32
    return %c0_i32, %c0_i32_0, %c0_i32_1 : i32, i32, i32
  }
  func.func @transform_14(%arg0: i32) -> (i32, i32, i32) {
    %c0_i32 = arith.constant 0 : i32
    %c0_i32_0 = arith.constant 0 : i32
    %c0_i32_1 = arith.constant 0 : i32
    %c0_i32_2 = arith.constant 0 : i32
    return %c0_i32, %c0_i32_0, %c0_i32_1 : i32, i32, i32
  }
  func.func @transform_15(%arg0: i32) -> (i32, i32, i32) {
    %c0_i32 = arith.constant 0 : i32
    %c0_i32_0 = arith.constant 0 : i32
    %c0_i32_1 = arith.constant 0 : i32
    %c0_i32_2 = arith.constant 0 : i32
    return %c0_i32, %c0_i32_0, %c0_i32_1 : i32, i32, i32
  }
  func.func @transform_16(%arg0: i32) -> (i32, i32) {
    %c0_i32 = arith.constant 0 : i32
    %c0_i32_0 = arith.constant 0 : i32
    %c0_i32_1 = arith.constant 0 : i32
    return %c0_i32, %c0_i32_0 : i32, i32
  }
  func.func @transform_17(%arg0: i32) -> (i32, i32) {
    %c0_i32 = arith.constant 0 : i32
    %c0_i32_0 = arith.constant 0 : i32
    %c0_i32_1 = arith.constant 0 : i32
    return %c0_i32, %c0_i32_0 : i32, i32
  }
  func.func @transform_18(%arg0: i32) -> (i32, i32, i32) {
    %c0_i32 = arith.constant 0 : i32
    %c0_i32_0 = arith.constant 0 : i32
    %c0_i32_1 = arith.constant 0 : i32
    return %arg0, %c0_i32, %c0_i32_0 : i32, i32, i32
  }
}

</mosaic_0001>

<bundles_post_ra>
// kernel: tpu_custom_call.1
= control target key start
LH: loop header
LB: loop body
LE: loop exit
PB: predicated region body
PF: predicated region fallthrough
CT: control target
= control target key end

     0   :  { %s3941_s0 = inlined_call_operand.hbm [shape: f32[2,1,32], index: 0, kind: input, shape index: {}]   ;;  %s3942_s1 = inlined_call_operand.vmem [shape: f32[2,8,32], index: 1, kind: input, shape index: {}]   ;;  %s3943_s2 = inlined_call_operand.hbm [shape: f32[32,128], index: 2, kind: input, shape index: {}]   ;;  %s3944_s3 = inlined_call_operand.vmem [shape: f32[1,128], index: 3, kind: input, shape index: {}]   ;;  %s3945_s4 = inlined_call_operand.vmem [shape: f32[2,32,96], index: 4, kind: input, shape index: {}]   ;;  %s3946_s5 = inlined_call_operand.hbm [shape: f32[2,1,96], index: 5, kind: input, shape index: {}]   ;;  %s3947_s6 = inlined_call_operand.vmem [shape: f32[2,32,32], index: 6, kind: input, shape index: {}]   ;;  %s3948_s7 = inlined_call_operand.hbm [shape: f32[2,1,32], index: 7, kind: input, shape index: {}]   ;;  %s3949_s8 = inlined_call_operand.hbm [shape: f32[2,1,32], index: 8, kind: input, shape index: {}]   ;;  %s3950_s9 = inlined_call_operand.hbm [shape: f32[2,1,32], index: 9, kind: input, shape index: {}]   ;;  %s3951_s10 = inlined_call_operand.vmem [shape: f32[2,32,64], index: 10, kind: input, shape index: {}]   ;;  %s3952_s11 = inlined_call_operand.hbm [shape: f32[2,1,64], index: 11, kind: input, shape index: {}]   ;;  %s3953_s12 = inlined_call_operand.vmem [shape: f32[2,64,32], index: 12, kind: input, shape index: {}]   ;;  %s3954_s13 = inlined_call_operand.hbm [shape: f32[2,1,32], index: 13, kind: input, shape index: {}]   ;;  %s3955_s14 = inlined_call_operand.hbm [shape: f32[2,1,32], index: 14, kind: input, shape index: {}]   ;;  %s3956_s15 = inlined_call_operand.vmem [shape: f32[2,1,32], index: 15, kind: input, shape index: {}]   ;;  %s3957_s16 = inlined_call_operand.vmem [shape: f32[32,4], index: 16, kind: input, shape index: {}]   ;;  %s3958_s17 = inlined_call_operand.vmem [shape: f32[4,32], index: 17, kind: input, shape index: {}]   ;;  %s3959_s18 = inlined_call_operand.hbm [shape: f32[2,1,32], index: 18, kind: output, shape index: {}]  }
   0x1   :  { %3965 = sst [smem:[#allocation24_spill]] %s3941_s0 }
   0x2   :  { %3966 = sst [smem:[#allocation25_spill]] %s3942_s1 }
   0x3   :  { %3967 = sst [smem:[#allocation26_spill]] %s3943_s2 }
   0x4   :  { %3968 = sst [smem:[#allocation27_spill]] %s3956_s15 }
   0x5   :  { %3969 = sst [smem:[#allocation28_spill]] %s3959_s18 }
   0x6   :  { %23 = vsyncpa [#allocation3], 0 }
   0x7   :  { %24 = vsyncpa [#allocation6], 0 }
   0x8   :  { %25 = vsyncpa [#allocation9], 0 }
   0x9   :  { %26 = vsyncpa [#allocation12], 0 }
   0xa   :  { %27 = vsyncpa [#allocation15], 0 }
   0xb   :  { %28 = vsyncpa [#allocation4], 0  ;;  %s3227_s27 = smov [#allocation5]   ;;  %s3970_s0 = sld [smem:[#allocation26_spill]] }
   0xc   :  { %s48_s28 = sshll.u32 %s3227_s27, 4  ;;  %s49_s28 = int_to_ptr.vmem [resolvable:$true] %s48_s28 }
  0x11   :  { %s2995_s19 = scalar_lea.hbm %s3970_s0, 512 }
  0x12   :  { %p2996_p0 = scmp.ne.s32.totalorder %s3970_s0, %s2995_s19  ;;  %p2999_p1 = scmp.lt.u32.totalorder %s2995_s19, %s3970_s0 }
  0x14   :  { %p3001_p2 = pnand %p2999_p1, %p2996_p0 }
  0x16   :  { %3004 = shalt.err (!%p3001_p2)
}
  0x17   :  { %s3005_s2 = scalar_lea.vmem %s49_s28, 512  ;;  %p3010_p4 = scmp.lt.s32.totalorder %s49_s28, %s49_s28 }
  0x18   :  { %p3006_p3 = scmp.ne.s32.totalorder %s49_s28, %s3005_s2  ;;  %p3011_p5 = scmp.lt.s32.totalorder %s3005_s2, %s3005_s2 }
  0x1a   :  { %p3012_p6 = por %p3011_p5, %p3010_p4 }
  0x1c   :  { %p3013_p7 = pnand %p3012_p6, %p3006_p3 }
  0x1e   :  { %3016 = shalt.err (!%p3013_p7)
}
  0x1f   :  { %s3228_s23 = smov 128   ;;  %s3229_s24 = smov 8  }
  0x20   :  { %54 = dma.hbm_to_vmem [thread:$0]  %s3970_s0, 512, %s49_s28, [#allocation6], %s3228_s23, %s3228_s23, %s3229_s24  }
  0x21   :  { %s3230_s27 = smov [#allocation8]   ;;  %s3231_s30 = smov [#allocation11]  }
  0x22   :  { %s78_s29 = sshll.u32 %s3230_s27, 4  ;;  %s102_s19 = sshll.u32 %s3231_s30, 4  ;;  %s79_s29 = int_to_ptr.vmem [resolvable:$true] %s78_s29  ;;  %s103_s19 = int_to_ptr.vmem [resolvable:$true] %s102_s19 }
  0x23   :  { %s3017_s21 = scalar_lea.hbm %s3948_s7, 32 }
  0x24   :  { %p3018_p8 = scmp.ne.s32.totalorder %s3948_s7, %s3017_s21  ;;  %p3021_p9 = scmp.lt.u32.totalorder %s3017_s21, %s3948_s7 }
  0x26   :  { %p3023_p10 = pnand %p3021_p9, %p3018_p8 }
  0x28   :  { %3026 = shalt.err (!%p3023_p10)
}
  0x29   :  { %s3027_s28 = scalar_lea.vmem %s79_s29, 32  ;;  %p3032_p12 = scmp.lt.s32.totalorder %s79_s29, %s79_s29 }
  0x2a   :  { %p3028_p11 = scmp.ne.s32.totalorder %s79_s29, %s3027_s28  ;;  %p3033_p13 = scmp.lt.s32.totalorder %s3027_s28, %s3027_s28 }
  0x2c   :  { %p3034_p0 = por %p3033_p13, %p3032_p12 }
  0x2e   :  { %p3035_p1 = pnand %p3034_p0, %p3028_p11 }
  0x30   :  { %3038 = shalt.err (!%p3035_p1)
}
  0x31   :  { %s3232_s0 = smov 16   ;;  %s3233_s23 = smov 1  }
  0x32   :  { %84 = dma.hbm_to_vmem [thread:$0]  %s3948_s7, 32, %s79_s29, [#allocation9], %s3232_s0, %s3232_s0, %s3233_s23  }
  0x33   :  { %s3039_s26 = scalar_lea.hbm %s3950_s9, 32 }
  0x34   :  { %p3040_p2 = scmp.ne.s32.totalorder %s3950_s9, %s3039_s26  ;;  %p3043_p3 = scmp.lt.u32.totalorder %s3039_s26, %s3950_s9 }
  0x36   :  { %p3045_p4 = pnand %p3043_p3, %p3040_p2 }
  0x38   :  { %3048 = shalt.err (!%p3045_p4)
}
  0x39   :  { %s3049_s21 = scalar_lea.vmem %s103_s19, 32  ;;  %p3054_p6 = scmp.lt.s32.totalorder %s103_s19, %s103_s19 }
  0x3a   :  { %p3050_p5 = scmp.ne.s32.totalorder %s103_s19, %s3049_s21  ;;  %p3055_p7 = scmp.lt.s32.totalorder %s3049_s21, %s3049_s21 }
  0x3c   :  { %p3056_p8 = por %p3055_p7, %p3054_p6 }
  0x3e   :  { %p3057_p9 = pnand %p3056_p8, %p3050_p5 }
  0x40   :  { %3060 = shalt.err (!%p3057_p9)
}
  0x41   :  { %108 = dma.hbm_to_vmem [thread:$0]  %s3950_s9, 32, %s103_s19, [#allocation12], %s3232_s0, %s3232_s0, %s3233_s23  }
  0x42   :  { %s3234_s22 = smov [#allocation14]   ;;  %s3235_s28 = smov [#allocation2]  }
  0x43   :  { %s130_s2 = sshll.u32 %s3234_s22, 4  ;;  %s34_s24 = sshll.u32 %s3235_s28, 4  ;;  %s131_s2 = int_to_ptr.vmem [resolvable:$true] %s130_s2  ;;  %s35_s24 = int_to_ptr.vmem [resolvable:$true] %s34_s24 }
  0x44   :  { %s3061_s18 = scalar_lea.hbm %s3954_s13, 32 }
  0x45   :  { %p3062_p10 = scmp.ne.s32.totalorder %s3954_s13, %s3061_s18  ;;  %p3065_p11 = scmp.lt.u32.totalorder %s3061_s18, %s3954_s13 }
  0x47   :  { %p3067_p12 = pnand %p3065_p11, %p3062_p10 }
  0x49   :  { %3070 = shalt.err (!%p3067_p12)
}
  0x4a   :  { %s3071_s9 = scalar_lea.vmem %s131_s2, 32  ;;  %p3076_p0 = scmp.lt.s32.totalorder %s131_s2, %s131_s2 }
  0x4b   :  { %p3072_p13 = scmp.ne.s32.totalorder %s131_s2, %s3071_s9  ;;  %p3077_p1 = scmp.lt.s32.totalorder %s3071_s9, %s3071_s9 }
  0x4d   :  { %p3078_p2 = por %p3077_p1, %p3076_p0 }
  0x4f   :  { %p3079_p3 = pnand %p3078_p2, %p3072_p13 }
  0x51   :  { %3082 = shalt.err (!%p3079_p3)
}
  0x52   :  { %136 = dma.hbm_to_vmem [thread:$0]  %s3954_s13, 32, %s131_s2, [#allocation15], %s3232_s0, %s3232_s0, %s3233_s23  }
  0x53   :  { %s3971_s29 = sld [smem:[#allocation24_spill]] }
  0x59   :  { %s3083_s22 = scalar_lea.hbm %s3971_s29, 32 }
  0x5a   :  { %p3084_p4 = scmp.ne.s32.totalorder %s3971_s29, %s3083_s22  ;;  %p3087_p5 = scmp.lt.u32.totalorder %s3083_s22, %s3971_s29 }
  0x5c   :  { %p3089_p6 = pnand %p3087_p5, %p3084_p4 }
  0x5e   :  { %3092 = shalt.err (!%p3089_p6)
}
  0x5f   :  { %s3093_s26 = scalar_lea.vmem %s35_s24, 32  ;;  %p3098_p8 = scmp.lt.s32.totalorder %s35_s24, %s35_s24 }
  0x60   :  { %p3094_p7 = scmp.ne.s32.totalorder %s35_s24, %s3093_s26  ;;  %p3099_p9 = scmp.lt.s32.totalorder %s3093_s26, %s3093_s26 }
  0x62   :  { %p3100_p10 = por %p3099_p9, %p3098_p8 }
  0x64   :  { %p3101_p11 = pnand %p3100_p10, %p3094_p7 }
  0x66   :  { %3104 = shalt.err (!%p3101_p11)
}
  0x67   :  { %40 = dma.hbm_to_vmem [thread:$0]  %s3971_s29, 32, %s35_s24, [#allocation3], %s3232_s0, %s3232_s0, %s3233_s23  }
  0x68   :  { %s3236_s27 = smov [#allocation7]   ;;  %s3237_s1 = smov [#allocation10]  }
  0x69   :  { %s64_s30 = sshll.u32 %s3236_s27, 4  ;;  %s90_s9 = sshll.u32 %s3237_s1, 4  ;;  %s65_s30 = int_to_ptr.vmem [resolvable:$true] %s64_s30  ;;  %s91_s9 = int_to_ptr.vmem [resolvable:$true] %s90_s9 }
  0x6a   :  { %s3105_s21 = scalar_lea.hbm %s3946_s5, 32 }
  0x6b   :  { %p3106_p12 = scmp.ne.s32.totalorder %s3946_s5, %s3105_s21  ;;  %p3109_p13 = scmp.lt.u32.totalorder %s3105_s21, %s3946_s5 }
  0x6d   :  { %p3111_p0 = pnand %p3109_p13, %p3106_p12 }
  0x6f   :  { %3114 = shalt.err (!%p3111_p0)
}
  0x70   :  { %s3115_s24 = scalar_lea.vmem %s65_s30, 32  ;;  %p3120_p2 = scmp.lt.s32.totalorder %s65_s30, %s65_s30 }
  0x71   :  { %p3116_p1 = scmp.ne.s32.totalorder %s65_s30, %s3115_s24  ;;  %p3121_p3 = scmp.lt.s32.totalorder %s3115_s24, %s3115_s24 }
  0x73   :  { %p3122_p4 = por %p3121_p3, %p3120_p2 }
  0x75   :  { %p3123_p5 = pnand %p3122_p4, %p3116_p1 }
  0x77   :  { %3126 = shalt.err (!%p3123_p5)
}
  0x78   :  { %70 = dma.hbm_to_vmem [thread:$0]  %s3946_s5, 32, %s65_s30, [#allocation6], %s3232_s0, %s3232_s0, %s3233_s23  }
  0x79   :  { %s3127_s13 = scalar_lea.hbm %s3949_s8, 32 }
  0x7a   :  { %p3128_p6 = scmp.ne.s32.totalorder %s3949_s8, %s3127_s13  ;;  %p3131_p7 = scmp.lt.u32.totalorder %s3127_s13, %s3949_s8 }
  0x7c   :  { %p3133_p8 = pnand %p3131_p7, %p3128_p6 }
  0x7e   :  { %3136 = shalt.err (!%p3133_p8)
}
  0x7f   :  { %s3137_s20 = scalar_lea.vmem %s91_s9, 32  ;;  %p3142_p10 = scmp.lt.s32.totalorder %s91_s9, %s91_s9 }
  0x80   :  { %p3138_p9 = scmp.ne.s32.totalorder %s91_s9, %s3137_s20  ;;  %p3143_p11 = scmp.lt.s32.totalorder %s3137_s20, %s3137_s20 }
  0x82   :  { %p3144_p12 = por %p3143_p11, %p3142_p10 }
  0x84   :  { %p3145_p13 = pnand %p3144_p12, %p3138_p9 }
  0x86   :  { %3148 = shalt.err (!%p3145_p13)
}
  0x87   :  { %96 = dma.hbm_to_vmem [thread:$0]  %s3949_s8, 32, %s91_s9, [#allocation9], %s3232_s0, %s3232_s0, %s3233_s23  }
  0x88   :  { %s3238_s21 = smov [#allocation13]   ;;  %s3239_s22 = smov [#allocation16]  }
  0x89   :  { %s116_s7 = sshll.u32 %s3238_s21, 4  ;;  %s142_s28 = sshll.u32 %s3239_s22, 4  ;;  %s117_s7 = int_to_ptr.vmem [resolvable:$true] %s116_s7  ;;  %s143_s28 = int_to_ptr.vmem [resolvable:$true] %s142_s28 }
  0x8a   :  { %s3149_s29 = scalar_lea.hbm %s3952_s11, 32 }
  0x8b   :  { %p3150_p0 = scmp.ne.s32.totalorder %s3952_s11, %s3149_s29  ;;  %p3153_p1 = scmp.lt.u32.totalorder %s3149_s29, %s3952_s11 }
  0x8d   :  { %p3155_p2 = pnand %p3153_p1, %p3150_p0 }
  0x8f   :  { %3158 = shalt.err (!%p3155_p2)
}
  0x90   :  { %s3159_s8 = scalar_lea.vmem %s117_s7, 32  ;;  %p3164_p4 = scmp.lt.s32.totalorder %s117_s7, %s117_s7 }
  0x91   :  { %p3160_p3 = scmp.ne.s32.totalorder %s117_s7, %s3159_s8  ;;  %p3165_p5 = scmp.lt.s32.totalorder %s3159_s8, %s3159_s8 }
  0x93   :  { %p3166_p6 = por %p3165_p5, %p3164_p4 }
  0x95   :  { %p3167_p7 = pnand %p3166_p6, %p3160_p3 }
  0x97   :  { %3170 = shalt.err (!%p3167_p7)
}
  0x98   :  { %122 = dma.hbm_to_vmem [thread:$0]  %s3952_s11, 32, %s117_s7, [#allocation12], %s3232_s0, %s3232_s0, %s3233_s23  }
  0x99   :  { %s3171_s19 = scalar_lea.hbm %s3955_s14, 32 }
  0x9a   :  { %p3172_p8 = scmp.ne.s32.totalorder %s3955_s14, %s3171_s19  ;;  %p3175_p9 = scmp.lt.u32.totalorder %s3171_s19, %s3955_s14 }
  0x9c   :  { %p3177_p10 = pnand %p3175_p9, %p3172_p8 }
  0x9e   :  { %3180 = shalt.err (!%p3177_p10)
}
  0x9f   :  { %s3181_s22 = scalar_lea.vmem %s143_s28, 32  ;;  %p3186_p12 = scmp.lt.s32.totalorder %s143_s28, %s143_s28 }
  0xa0   :  { %p3182_p11 = scmp.ne.s32.totalorder %s143_s28, %s3181_s22  ;;  %p3187_p13 = scmp.lt.s32.totalorder %s3181_s22, %s3181_s22 }
  0xa2   :  { %p3188_p0 = por %p3187_p13, %p3186_p12 }
  0xa4   :  { %p3189_p1 = pnand %p3188_p0, %p3182_p11 }
  0xa6   :  { %3192 = shalt.err (!%p3189_p1)
}
  0xa7   :  { %148 = dma.hbm_to_vmem [thread:$0]  %s3955_s14, 32, %s143_s28, [#allocation15], %s3232_s0, %s3232_s0, %s3233_s23  }
  0xa8   :  { %3215 = dma.done.wait [#allocation3], 32  }
  0xa9   :  { %3216 = vsyncadd [#allocation3], 4294967264 }
  0xaa   :  { %3217 = dma.done.wait [#allocation6], 544  }
  0xab   :  { %3218 = vsyncadd [#allocation6], 4294966752 }
  0xac   :  { %3219 = dma.done.wait [#allocation9], 64  }
  0xad   :  { %3220 = vsyncadd [#allocation9], 4294967232 }
  0xae   :  { %3221 = dma.done.wait [#allocation12], 64  }
  0xaf   :  { %3222 = vsyncadd [#allocation12], 4294967232 }
  0xb0   :  { %3223 = dma.done.wait [#allocation15], 64  }
  0xb1   :  { %3224 = vsyncadd [#allocation15], 4294967232  ;;  %v3240_v0 = vmov 0.0|0.0   ;;  %vm3241_vm0 = vmmov 0   ;;  %v3242_v1 = vmov 0.0   ;;  %vm202_vm1 = vcmask 261120  }
  0xb2   :  { %2880 = vmatprep.subr.bf16.mxu0 %v3240_v0  ;;  %2725 = vmatprep.mubr.msk.f32.mxu0 %vm3241_vm0, %v3242_v1  ;;  %v3243_v2 = vmov 1966171168   ;;  %v301_v4 = vlaneseq  ;;  %v191_v5 = vld [vmem:[#allocation5] sm:$0xff]  ;;  %v192_v6 = vld [vmem:[#allocation5 + $0x8] sm:$0xff]  ;;  %v193_v7 = vld [vmem:[#allocation5 + $0x10] sm:$0xff]  ;;  %s3972_s25 = sld [smem:[#allocation25_spill]] }
  0xb3   :  { %v299_v3 = vunpack.c.l.s4 %v3243_v2  ;;  %v2866_v8 = vpack.c.bf16 %v192_v6, %v191_v5  ;;  %v194_v9 = vld [vmem:[#allocation5 + $0x18] sm:$0xff]  ;;  %v285_v17 = vld [vmem:[%s3945_s4 + $0x8] sm:$0xff]  ;;  %v286_v22 = vld [vmem:[%s3945_s4 + $0x10] sm:$0xff]  ;;  %s3245_s28 = smov 64   ;;  %vm430_vm2 = vcmask 1041408   ;;  %vm432_vm3 = vcmask 1043456  }
  0xb4   :  { %v2870_v11 = vpack.c.bf16 %v194_v9, %v193_v7  ;;  %v3482_v13 = vshrl.u32 %v301_v4, 7  ;;  %v3484_v14 = vld [vmem:[#allocation2] sm:$0x1]  ;;  %v3486_v15 = vld [vmem:[#allocation2 + $0x1] sm:$0x1]  ;;  %v287_v23 = vld [vmem:[%s3945_s4 + $0x18] sm:$0xff] }
  0xb5   :  { %2867 = vmatprep.subr.bf16.mxu1 %v2866_v8  ;;  %v300_v12 = vunpack.c.0.s8 %v299_v3  ;;  %v284_v16 = vld [vmem:[%s3945_s4] sm:$0xff]  ;;  %v297_v18 = vcombine.low %v3484_v14, %v3486_v15  ;;  %v2878_v25 = vpack.c.bf16 %v287_v23, %v286_v22  ;;  %v187_v28 = vld [vmem:[%s3957_s16 + $0x8] sm:$0xff]  ;;  %v188_v31 = vld [vmem:[%s3957_s16 + $0x10] sm:$0xff]  ;;  %vm434_vm4 = vcmask 1045504   ;;  %s3246_s2 = smov 32   ;;  %s3973_s7 = sld [smem:[#allocation27_spill]] }
  0xb6   :  { %2869 = vmatpush3.bf16.msra.mxu1 %v2866_v8  ;;  %v2875_v21 = vpack.c.bf16 %v285_v17, %v284_v16  ;;  %v186_v27 = vld [vmem:[%s3957_s16] sm:$0xff]  ;;  %v189_v32 = vld [vmem:[%s3957_s16 + $0x18] sm:$0xff]  ;;  %v3555_v47 = vsub.s32 0, %v3482_v13  ;;  %vm525_vm5 = vcmask 31744   ;;  %vm542_vm6 = vcmask 1041409  }
  0xb7   :  { %2871 = vmatprep.subr.bf16.mxu1 %v2870_v11  ;;  %v3497_v19 = vsub.s32 %v300_v12, %v3482_v13  ;;  %v3525_v29 = vpack.c.bf16 %v187_v28, %v186_v27  ;;  %v2557_v30 = vld [vmem:[%s3944_s3] ss:$0 sm:$0xff]  ;;  %v3538_v34 = vpack.c.bf16 %v189_v32, %v188_v31  ;;  %s3244_s3 = smov 96   ;;  %v2560_v37 = vld [vmem:[#allocation7] ss:$0 sm:$0xff]  ;;  %vm919_vm7 = vcmask 254976  }
  0xb8   :  { %v184_v10 = vld [vmem:[%s3972_s25] sm:$0xff]  ;;  %v185_v20 = vld [vmem:[%s3972_s25 + $0x8] sm:$0xff]  ;;  %vm1165_vm8 = vcmask 523264   ;;  %vm2533_vm9 = vcmask 253952  }
  0xb9   :  { %2703 = vmatprep.mubr.msk.f32.mxu1 %vm202_vm1, %v184_v10  ;;  %v304_v24 = vrot.slane %v297_v18, %v3497_v19  ;;  %2882 = vmatpush3.bf16.msra.mxu0 %v3525_v29  ;;  %v3577_v59 = vld [vmem:[%s3958_s17] sm:$0xf] }
  0xba   :  { %2873 = vmatpush3.bf16.msra.mxu1 %v2870_v11  ;;  %2883 = vmatprep.subr.bf16.mxu0 %v3240_v0 }
  0xbb   :  { %2874 = vmatprep.subr.bf16.mxu1 %v3240_v0  ;;  %v311_v26 = vrot.slane %v304_v24, %v3497_v19 }
  0xbd   :  { %2704 = vmatmul.mubr.msk.f32.vlgmr.msra.gmra.mrb[0].mxu1 %vm202_vm1, %v185_v20  ;;  %2885 = vmatpush3.bf16.msra.mxu0 %v3538_v34 }
  0xbe   :  { %2876 = vmatpush3.bf16.msra.mxu1 %v2875_v21  ;;  %2714 = vmatprep.mubr.msk.f32.mxu1 %vm3241_vm0, %v3242_v1 }
  0xbf   :  { %2877 = vmatprep.subr.bf16.mxu1 %v3240_v0  ;;  %2892 = vmatprep.subr.bf16.mxu0 %v3240_v0 }
  0xc2   :  { %2879 = vmatpush3.bf16.msra.mxu1 %v2878_v25 }
  0xc3   :  { %2734 = vmatprep.subr.mxu1 %v3242_v1 }
  0xc5   :  { %2715 = vmatmul.mubr.msk.f32.vlgmr.msra.gmra.mrb[2].mxu1 %vm202_vm1, %v311_v26 }
  0xc6   :  { %2736 = vmatprep.mubr.msk.f32.mxu1 %vm3241_vm0, %v3242_v1  ;;  %2735 = vmatpush3.msk.msra.mxu1 %vm432_vm3, %v3577_v59 }
  0xc7   :  { %2886 = vmatprep.subr.bf16.mxu1 %v3240_v0 }
 0x190   :  { %v2705_v33 = vpop.f32.mrb[0].mxu1 }
 0x191   :  { %v3540_v35 = vadd.f32 %v2705_v33, %v2557_v30  ;;  %v275_v36 = vpop.f32.mrb[1].mxu1 }
 0x192   :  { %v3548_v41 = vadd.f32 %v2557_v30, %v275_v36 }
 0x193   :  { %763 = vrot.lane.b32.xlu1 %v3540_v35, %s3244_s3 }
 0x198   :  { %v380_v38 = vpop.f32.mrb[2].mxu1 }
 0x199   :  { %v381_v39 = vadd.f32 %v2560_v37, %v380_v38  ;;  %v2716_v40 = vpop.f32.mrb[3].mxu1 }
 0x19b   :  { %755 = vrot.lane.b32.xlu1 %v381_v39, %s3245_s28  ;;  %417 = vrot.lane.b32.xlu0 %v381_v39, %s3244_s3  ;;  %v391_v42 = vrot.slane %v381_v39, %v3497_v19 }
 0x19d   :  { %v392_v45 = vcombine.high %v391_v42, %v391_v42  ;;  %v399_v46 = vrot.slane %v391_v42, %v3497_v19 }
 0x19f   :  { %761 = vrot.lane.b32.xlu0 %v3548_v41, %s3244_s3  ;;  %v410_v53 = vrot.slane %v399_v46, %v3555_v47  ;;  %v406_v54 = vrot.slane %v392_v45, %v3497_v19 }
 0x1a1   :  { %v421_v56 = vmul.f32 %v410_v53, %v3548_v41  ;;  %v414_v57 = vrot.slane %v406_v54, %v3555_v47 }
 0x1a3   :  { %v422_v58 = vmul.f32 %v414_v57, %v3540_v35 }
 0x20d   :  { %v418_v43 = vpop.permute.xlu0 %417 }
 0x20e   :  { %v420_v44 = vmul.f32 %v418_v43, %v381_v39 }
 0x210   :  { %v424_v48 = vrot.slane %v420_v44, 6  ;;  %v426_v49 = vrot.slane %v420_v44, 4  ;;  %v428_v50 = vrot.slane %v420_v44, 2 }
 0x212   :  { %v431_v51 = vsel %vm430_vm2, %v420_v44, %v424_v48 }
 0x213   :  { %v433_v52 = vsel %vm432_vm3, %v431_v51, %v426_v49 }
 0x214   :  { %v435_v55 = vsel %vm434_vm4, %v433_v52, %v428_v50 }
 0x215   :  { %2726 = vmatmul.mubr.msk.f32.vlgmr.msra.gmra.mrb[0].mxu0 %vm202_vm1, %v435_v55 }
 0x216   :  { %2728 = vmatprep.mubr.msk.f32.mxu0 %vm3241_vm0, %v3242_v1 }
 0x219   :  { %2729 = vmatmul.mubr.msk.f32.gmra.mrb[2].mxu0 %vm202_vm1, %v421_v56 }
 0x21a   :  { %2731 = vmatprep.mubr.msk.f32.mxu0 %vm3241_vm0, %v3242_v1 }
 0x21d   :  { %2732 = vmatmul.mubr.msk.f32.gmra.mrb[4].mxu0 %vm202_vm1, %v422_v58 }
 0x21e   :  { %2764 = vmatprep.mubr.msk.f32.mxu0 %vm3241_vm0, %v3242_v1 }
 0x2e8   :  { %v511_v60 = vpop.f32.mrb[0].mxu0 }
 0x2e9   :  { %v2727_v61 = vpop.f32.mrb[1].mxu0 }
 0x2ec   :  { %v516_v62 = vpop.f32.mrb[2].mxu0 }
 0x2ed   :  { %v526_v63 = vsel %vm525_vm5, %v516_v62, -inf  ;;  %v2730_v2 = vpop.f32.mrb[3].mxu0 }
 0x2ee   :  { %v527_v3 = vrot.slane %v526_v63, 4 }
 0x2f0   :  { %v528_v4 = vmax.f32 %v526_v63, %v527_v3  ;;  %v521_v5 = vpop.f32.mrb[4].mxu0 }
 0x2f1   :  { %v533_v6 = vsel %vm525_vm5, %v521_v5, -inf  ;;  %v2733_v7 = vpop.f32.mrb[5].mxu0 }
 0x2f2   :  { %v529_v8 = vrot.slane %v528_v4, 2  ;;  %v534_v9 = vrot.slane %v533_v6, 4 }
 0x2f4   :  { %v530_v10 = vmax.f32 %v528_v4, %v529_v8  ;;  %v535_v11 = vmax.f32 %v533_v6, %v534_v9 }
 0x2f6   :  { %v536_v12 = vrot.slane %v535_v11, 2  ;;  %v531_v16 = vrot.slane %v530_v10, 1 }
 0x2f8   :  { %v537_v17 = vmax.f32 %v535_v11, %v536_v12  ;;  %v532_v20 = vmax.f32 %v530_v10, %v531_v16 }
 0x2fa   :  { %v538_v18 = vrot.slane %v537_v17, 1 }
 0x2fc   :  { %v539_v21 = vmax.f32 %v537_v17, %v538_v18 }
 0x2fe   :  { %v543_v22 = vsel %vm542_vm6, %v539_v21, %v532_v20 }
 0x2ff   :  { %v545_v23 = vmax.f32 %v511_v60, %v543_v22 }
 0x301   :  { %v553_v24 = vrot.slane %v545_v23, %v3497_v19  ;;  %v579_v25 = vrot.slane %v545_v23, 6  ;;  %v581_v26 = vrot.slane %v545_v23, 4  ;;  %v583_v30 = vrot.slane %v545_v23, 2 }
 0x303   :  { %v554_v27 = vcombine.high %v553_v24, %v553_v24  ;;  %v561_v28 = vrot.slane %v553_v24, %v3497_v19  ;;  %v585_v31 = vsel %vm430_vm2, %v545_v23, %v579_v25  ;;  %v788_v25 = vld [vmem:[%s3947_s6] sm:$0xff] }
 0x304   :  { %v586_v32 = vsel %vm432_vm3, %v585_v31, %v581_v26  ;;  %v789_v26 = vld [vmem:[%s3947_s6 + $0x8] sm:$0xff] }
 0x305   :  { %v568_v33 = vrot.slane %v554_v27, %v3497_v19  ;;  %v572_v36 = vrot.slane %v561_v28, %v3555_v47  ;;  %v587_v37 = vsel %vm434_vm4, %v586_v32, %v583_v30  ;;  %v2887_v27 = vpack.c.bf16 %v789_v26, %v788_v25  ;;  %v790_v28 = vld [vmem:[%s3947_s6 + $0x10] sm:$0xff]  ;;  %v791_v30 = vld [vmem:[%s3947_s6 + $0x18] sm:$0xff]  ;;  %v1042_v26 = vld [vmem:[%s3951_s10 + $0x8] sm:$0xff] }
 0x306   :  { %v588_v38 = vsub.f32 %v511_v60, %v587_v37  ;;  %v2890_v31 = vpack.c.bf16 %v791_v30, %v790_v28  ;;  %v1043_v28 = vld [vmem:[%s3951_s10 + $0x10] sm:$0xff]  ;;  %v1044_v30 = vld [vmem:[%s3951_s10 + $0x18] sm:$0xff] }
 0x307   :  { %v576_v39 = vrot.slane %v568_v33, %v3555_v47  ;;  %v589_v40 = vsub.f32 %v516_v62, %v572_v36  ;;  %v762_v36 = vpop.permute.xlu0 %761 }
 0x308   :  { %v591_v50 = vmul.f32 1.442695, %v588_v38 }
 0x309   :  { %v590_v42 = vsub.f32 %v521_v5, %v576_v39  ;;  %v593_v43 = vmul.f32 1.442695, %v589_v40 }
 0x30b   :  { %2967 = vpow2.f32 %v593_v43  ;;  %v595_v44 = vmul.f32 1.442695, %v590_v42  ;;  %v764_v42 = vpop.permute.xlu1 %763 }
 0x30d   :  { %2969 = vpow2.f32 %v595_v44 }
 0x30e   :  { %2971 = vpow2.f32 %v591_v50 }
 0x315   :  { %v2968_v45 = vpop.eup %2967 }
 0x316   :  { %v597_v46 = vsel %vm525_vm5, %v2968_v45, 0.0 }
 0x317   :  { %v2970_v48 = vpop.eup %2969  ;;  %v598_v49 = vrot.slane %v597_v46, 4 }
 0x318   :  { %v604_v51 = vsel %vm525_vm5, %v2970_v48, 0.0  ;;  %v2972_v2 = vpop.eup %2971 }
 0x319   :  { %v599_v52 = vadd.f32 %v598_v49, %v597_v46  ;;  %v605_v53 = vrot.slane %v604_v51, 4 }
 0x31b   :  { %v600_v54 = vrot.slane %v599_v52, 2  ;;  %v606_v55 = vadd.f32 %v605_v53, %v604_v51 }
 0x31d   :  { %v601_v56 = vadd.f32 %v600_v54, %v599_v52  ;;  %v607_v57 = vrot.slane %v606_v55, 2 }
 0x31f   :  { %v602_v58 = vrot.slane %v601_v56, 1  ;;  %v608_v60 = vadd.f32 %v607_v57, %v606_v55 }
 0x321   :  { %v609_v61 = vrot.slane %v608_v60, 1  ;;  %v603_v62 = vadd.f32 %v602_v58, %v601_v56  ;;  %v756_v58 = vpop.permute.xlu1 %755 }
 0x323   :  { %v610_v63 = vadd.f32 %v609_v61, %v608_v60 }
 0x325   :  { %v613_v3 = vsel %vm542_vm6, %v610_v63, %v603_v62 }
 0x326   :  { %v615_v4 = vadd.f32 %v2972_v2, %v613_v3  ;;  %v2569_v3 = vld [vmem:[#allocation8] ss:$0 sm:$0xff] }
 0x328   :  { %2973 = vrcp.f32 %v615_v4 }
 0x332   :  { %v2974_v5 = vpop.eup %2973 }
 0x333   :  { %v651_v6 = vrot.slane %v2974_v5, 6  ;;  %v653_v7 = vrot.slane %v2974_v5, 4  ;;  %v625_v8 = vrot.slane %v2974_v5, %v3497_v19  ;;  %v655_v9 = vrot.slane %v2974_v5, 2 }
 0x335   :  { %v657_v10 = vsel %vm430_vm2, %v2974_v5, %v651_v6  ;;  %v633_v11 = vrot.slane %v625_v8, %v3497_v19  ;;  %v626_v12 = vcombine.high %v625_v8, %v625_v8 }
 0x336   :  { %v658_v16 = vsel %vm432_vm3, %v657_v10, %v653_v7 }
 0x337   :  { %v659_v17 = vsel %vm434_vm4, %v658_v16, %v655_v9  ;;  %v644_v18 = vrot.slane %v633_v11, %v3555_v47  ;;  %v640_v20 = vrot.slane %v626_v12, %v3497_v19 }
 0x338   :  { %v660_v21 = vmul.f32 %v2972_v2, %v659_v17 }
 0x339   :  { %v661_v22 = vmul.f32 %v2968_v45, %v644_v18  ;;  %v648_v23 = vrot.slane %v640_v20, %v3555_v47 }
 0x33a   :  { %2737 = vmatmul.mubr.msk.f32.vlgmr.msra.gmra.mrb[4].mxu1 %vm525_vm5, %v660_v21 }
 0x33b   :  { %2739 = vmatprep.mubr.msk.f32.mxu1 %vm3241_vm0, %v3242_v1  ;;  %v662_v24 = vmul.f32 %v2970_v48, %v648_v23  ;;  %2888 = vmatpush3.bf16.msra.mxu1 %v2887_v27 }
 0x33c   :  { %2889 = vmatprep.subr.bf16.mxu1 %v3240_v0 }
 0x33e   :  { %2740 = vmatmul.mubr.msk.f32.gmra.mrb[6].mxu1 %vm525_vm5, %v661_v22 }
 0x33f   :  { %2742 = vmatprep.mubr.msk.f32.mxu1 %vm3241_vm0, %v3242_v1  ;;  %2891 = vmatpush3.bf16.msra.mxu1 %v2890_v31  ;;  %v2896_v31 = vpack.c.bf16 %v1044_v30, %v1043_v28 }
 0x340   :  { %2898 = vmatprep.subr.bf16.mxu1 %v3240_v0 }
 0x342   :  { %2743 = vmatmul.mubr.msk.f32.gmra.mrb[8].mxu1 %vm525_vm5, %v662_v24 }
 0x343   :  { %2753 = vmatprep.mubr.msk.f32.mxu1 %vm3241_vm0, %v3242_v1 }
 0x40d   :  { %v741_v32 = vpop.f32.mrb[4].mxu1 }
 0x40e   :  { %v2738_v33 = vpop.f32.mrb[5].mxu1  ;;  %v758_v62 = vmul.f32 %v756_v58, %v741_v32 }
 0x411   :  { %v746_v37 = vpop.f32.mrb[6].mxu1 }
 0x412   :  { %v767_v38 = vmul.f32 %v762_v36, %v746_v37  ;;  %v2741_v39 = vpop.f32.mrb[7].mxu1 }
 0x414   :  { %v769_v40 = vsel %vm202_vm1, %v767_v38, 0.0 }
 0x415   :  { %v770_v43 = vrot.slane %v769_v40, 4  ;;  %v751_v44 = vpop.f32.mrb[8].mxu1 }
 0x416   :  { %v768_v45 = vmul.f32 %v764_v42, %v751_v44  ;;  %v2744_v46 = vpop.f32.mrb[9].mxu1  ;;  %v2571_v42 = vld [vmem:[#allocation10] ss:$0 sm:$0xff] }
 0x417   :  { %v771_v48 = vadd.f32 %v770_v43, %v769_v40  ;;  %v2572_v43 = vld [vmem:[#allocation11] ss:$0 sm:$0xff]  ;;  %v990_v44 = vrot.slane %v2571_v42, %v3497_v19 }
 0x418   :  { %v776_v49 = vsel %vm202_vm1, %v768_v45, 0.0  ;;  %v3660_v45 = vsub.s32 1, %v3482_v13  ;;  %v1021_v46 = vrot.slane %v2572_v43, %v3497_v19 }
 0x419   :  { %v772_v50 = vrot.slane %v771_v48, 2  ;;  %v777_v51 = vrot.slane %v776_v49, 4 }
 0x41a   :  { %v1029_v58 = vrot.slane %v1021_v46, %v3497_v19 }
 0x41b   :  { %v773_v52 = vadd.f32 %v772_v50, %v771_v48  ;;  %v778_v53 = vadd.f32 %v777_v51, %v776_v49  ;;  %v991_v48 = vcombine.high %v990_v44, %v990_v44  ;;  %v1022_v51 = vcombine.high %v1021_v46, %v1021_v46 }
 0x41d   :  { %v779_v54 = vrot.slane %v778_v53, 2  ;;  %v774_v55 = vrot.slane %v773_v52, 1 }
 0x41f   :  { %v780_v56 = vadd.f32 %v779_v54, %v778_v53  ;;  %v775_v60 = vadd.f32 %v774_v55, %v773_v52  ;;  %v998_v53 = vrot.slane %v990_v44, %v3497_v19  ;;  %v1005_v54 = vrot.slane %v991_v48, %v3497_v19 }
 0x421   :  { %v781_v57 = vrot.slane %v780_v56, 1 }
 0x423   :  { %v782_v61 = vadd.f32 %v781_v57, %v780_v56 }
 0x425   :  { %v785_v63 = vsel %vm542_vm6, %v782_v61, %v775_v60  ;;  %v1036_v60 = vrot.slane %v1022_v51, %v3497_v19 }
 0x426   :  { %v787_v2 = vadd.f32 %v785_v63, %v758_v62 }
 0x428   :  { %2754 = vmatmul.mubr.msk.f32.vlgmr.msra.gmra.mrb[10].mxu1 %vm202_vm1, %v787_v2 }
 0x429   :  { %2783 = vmatprep.mubr.msk.f32.mxu1 %vm3241_vm0, %v3242_v1 }
 0x4fb   :  { %v868_v4 = vpop.f32.mrb[10].mxu1 }
 0x4fc   :  { %v869_v5 = vadd.f32 %v2569_v3, %v868_v4  ;;  %v2755_v6 = vpop.f32.mrb[11].mxu1 }
 0x4fe   :  { %v879_v7 = vrot.slane %v869_v5, %v3497_v19 }
 0x500   :  { %v880_v8 = vcombine.high %v879_v7, %v879_v7  ;;  %v887_v9 = vrot.slane %v879_v7, %v3497_v19 }
 0x502   :  { %v894_v10 = vrot.slane %v880_v8, %v3497_v19  ;;  %v897_v11 = vadd.f32 %v887_v9, %v3484_v14  ;;  %v1150_v8 = vld [vmem:[%s3953_s12] sm:$0xff]  ;;  %v1151_v9 = vld [vmem:[%s3953_s12 + $0x8] sm:$0xff] }
 0x504   :  { %v898_v12 = vadd.f32 %v894_v10, %v3486_v15  ;;  %v925_v17 = vmul.f32 %v897_v11, %v897_v11  ;;  %v1041_v15 = vld [vmem:[%s3951_s10] sm:$0xff]  ;;  %v2899_v10 = vpack.c.bf16 %v1151_v9, %v1150_v8 }
 0x505   :  { %v2893_v27 = vpack.c.bf16 %v1042_v26, %v1041_v15 }
 0x506   :  { %v903_v16 = vcombine.low %v897_v11, %v898_v12  ;;  %v926_v18 = vmul.f32 %v898_v12, %v898_v12  ;;  %2900 = vmatpush3.bf16.msra.mxu1 %v2899_v10 }
 0x507   :  { %2894 = vmatpush3.bf16.msra.mxu0 %v2893_v27  ;;  %2901 = vmatprep.subr.bf16.mxu1 %v3240_v0 }
 0x508   :  { %v910_v20 = vrot.slane %v903_v16, %v3497_v19  ;;  %v929_v21 = vcombine.low %v925_v17, %v926_v18  ;;  %2895 = vmatprep.subr.bf16.mxu0 %v3240_v0  ;;  %v1154_v17 = vld [vmem:[%s3953_s12 + $0x20] sm:$0xff]  ;;  %v1155_v18 = vld [vmem:[%s3953_s12 + $0x28] sm:$0xff] }
 0x50a   :  { %v917_v22 = vrot.slane %v910_v20, %v3497_v19  ;;  %v936_v23 = vrot.slane %v929_v21, %v3497_v19  ;;  %v2905_v20 = vpack.c.bf16 %v1155_v18, %v1154_v17  ;;  %v1156_v21 = vld [vmem:[%s3953_s12 + $0x30] sm:$0xff] }
 0x50b   :  { %2897 = vmatpush3.bf16.msra.mxu0 %v2896_v31 }
 0x50c   :  { %v920_v24 = vsel %vm919_vm7, %v917_v22, 0.0  ;;  %v943_v25 = vrot.slane %v936_v23, %v3497_v19  ;;  %2910 = vmatprep.subr.bf16.mxu0 %v3240_v0  ;;  %v1157_v22 = vld [vmem:[%s3953_s12 + $0x38] sm:$0xff] }
 0x50d   :  { %921 = vadd.xlane.f32.xlu0 %v920_v24  ;;  %v2908_v23 = vpack.c.bf16 %v1157_v22, %v1156_v21  ;;  %v2573_v24 = vld [vmem:[#allocation13] ss:$0 sm:$0xff] }
 0x50e   :  { %v945_v14 = vsel %vm919_vm7, %v943_v25, 0.0 }
 0x50f   :  { %946 = vadd.xlane.f32.xlu1 %v945_v14 }
 0x59a   :  { %v922_v32 = vpop.xlane.xlu0 %921 }
 0x59b   :  { %v924_v33 = vmul.f32 0.03125, %v922_v32 }
 0x59c   :  { %v947_v36 = vpop.xlane.xlu1 %946 }
 0x59d   :  { %v948_v37 = vmul.f32 0.03125, %v947_v36  ;;  %v949_v38 = vmul.f32 %v924_v33, %v924_v33  ;;  %v955_v49 = vrot.slane %v924_v33, %v3555_v47  ;;  %v959_v50 = vrot.slane %v924_v33, %v3660_v45 }
 0x59f   :  { %v950_v39 = vsub.f32 %v948_v37, %v949_v38  ;;  %v962_v55 = vsub.f32 %v897_v11, %v955_v49  ;;  %v963_v56 = vsub.f32 %v898_v12, %v959_v50  ;;  %v1152_v11 = vld [vmem:[%s3953_s12 + $0x10] sm:$0xff]  ;;  %v1153_v12 = vld [vmem:[%s3953_s12 + $0x18] sm:$0xff]  ;;  %v2575_v38 = vld [vmem:[#allocation14] ss:$0 sm:$0xff] }
 0x5a0   :  { %v2902_v16 = vpack.c.bf16 %v1153_v12, %v1152_v11  ;;  %v2577_v11 = vld [vmem:[#allocation16] ss:$0 sm:$0xff] }
 0x5a1   :  { %v964_v40 = vadd.f32 1e-05, %v950_v39  ;;  %v1355_v12 = vrot.slane %v2577_v11, %v3497_v19 }
 0x5a2   :  { %2903 = vmatpush3.bf16.msra.mxu1 %v2902_v16  ;;  %v2578_v16 = vld [vmem:[%s3973_s7] ss:$0 sm:$0xff] }
 0x5a3   :  { %2975 = vrsqrt.f32 %v964_v40  ;;  %2904 = vmatprep.subr.bf16.mxu1 %v3240_v0  ;;  %v1386_v17 = vrot.slane %v2578_v16, %v3497_v19  ;;  %v1356_v18 = vcombine.high %v1355_v12, %v1355_v12 }
 0x5a5   :  { %v1387_v22 = vcombine.high %v1386_v17, %v1386_v17 }
 0x5a6   :  { %2906 = vmatpush3.bf16.msra.mxu1 %v2905_v20 }
 0x5a7   :  { %2907 = vmatprep.subr.bf16.mxu1 %v3240_v0 }
 0x5aa   :  { %2909 = vmatpush3.bf16.msra.mxu1 %v2908_v23 }
 0x5ab   :  { %2814 = vmatprep.subr.mxu1 %v3242_v1 }
 0x5ad   :  { %v2976_v52 = vpop.eup %2975 }
 0x5ae   :  { %v970_v57 = vrot.slane %v2976_v52, %v3555_v47  ;;  %v974_v13 = vrot.slane %v2976_v52, %v3660_v45 }
 0x5b0   :  { %v977_v61 = vmul.f32 %v970_v57, %v962_v55  ;;  %v978_v62 = vmul.f32 %v974_v13, %v963_v56 }
 0x5b2   :  { %v1008_v63 = vmul.f32 %v998_v53, %v977_v61  ;;  %v1009_v2 = vmul.f32 %v1005_v54, %v978_v62  ;;  %v2580_v61 = vld [vmem:[%s3945_s4 + $0x28] sm:$0xff]  ;;  %v2581_v62 = vld [vmem:[%s3945_s4 + $0x30] sm:$0xff] }
 0x5b4   :  { %v1039_v3 = vadd.f32 %v1029_v58, %v1008_v63  ;;  %v1040_v4 = vadd.f32 %v1036_v60, %v1009_v2  ;;  %v2579_v60 = vld [vmem:[%s3945_s4 + $0x20] sm:$0xff]  ;;  %v2582_v2 = vld [vmem:[%s3945_s4 + $0x38] sm:$0xff] }
 0x5b5   :  { %v2911_v63 = vpack.c.bf16 %v2580_v61, %v2579_v60 }
 0x5b6   :  { %v1054_v5 = vcombine.low %v1039_v3, %v1040_v4 }
 0x5b8   :  { %v1061_v6 = vrot.slane %v1054_v5, %v3497_v19 }
 0x5ba   :  { %v1068_v7 = vrot.slane %v1061_v6, %v3497_v19 }
 0x5bc   :  { %2765 = vmatmul.mubr.msk.f32.vlgmr.msra.gmra.mrb[6].mxu0 %vm202_vm1, %v1068_v7 }
 0x5bd   :  { %2794 = vmatprep.mubr.msk.f32.mxu0 %vm3241_vm0, %v3242_v1  ;;  %2912 = vmatpush3.bf16.msra.mxu0 %v2911_v63 }
 0x5be   :  { %2913 = vmatprep.subr.bf16.mxu0 %v3240_v0 }
 0x68f   :  { %v1137_v25 = vpop.f32.mrb[6].mxu0 }
 0x690   :  { %v1138_v14 = vadd.f32 %v2573_v24, %v1137_v25  ;;  %v2766_v15 = vpop.f32.mrb[7].mxu0  ;;  %v1363_v24 = vrot.slane %v1355_v12, %v3497_v19  ;;  %v1370_v25 = vrot.slane %v1356_v18, %v3497_v19 }
 0x692   :  { %v1141_v26 = vmul.f32 %v1138_v14, %v1138_v14 }
 0x694   :  { %v1142_v27 = vmul.f32 %v1141_v26, %v1138_v14 }
 0x696   :  { %v1143_v28 = vmul.f32 0.044715, %v1142_v27 }
 0x698   :  { %v1144_v30 = vadd.f32 %v1143_v28, %v1138_v14 }
 0x69a   :  { %v1145_v31 = vmul.f32 0.7978846, %v1144_v30 }
 0x69c   :  { %2977 = vtanh.f32 %v1145_v31  ;;  %v1394_v31 = vrot.slane %v1386_v17, %v3497_v19 }
 0x6a6   :  { %v2978_v32 = vpop.eup %2977 }
 0x6a7   :  { %v1147_v33 = vadd.f32 1.0, %v2978_v32  ;;  %v1401_v32 = vrot.slane %v1387_v22, %v3497_v19 }
 0x6a9   :  { %v1148_v36 = vmul.f32 0.5, %v1147_v33 }
 0x6ab   :  { %v1149_v37 = vmul.f32 %v1148_v36, %v1138_v14 }
 0x6ad   :  { %2784 = vmatmul.mubr.msk.f32.vlgmr.msra.gmra.mrb[12].mxu1 %vm1165_vm8, %v1149_v37 }
 0x6ae   :  { %2815 = vmatpush3.msk.msra.mxu1 %vm432_vm3, %v3577_v59  ;;  %2816 = vmatprep.mubr.msk.f32.mxu1 %vm3241_vm0, %v3242_v1 }
 0x6af   :  { %2928 = vmatprep.subr.bf16.mxu1 %v3240_v0 }
 0x780   :  { %v1235_v39 = vpop.f32.mrb[12].mxu1 }
 0x781   :  { %v1236_v40 = vadd.f32 %v2575_v38, %v1235_v39  ;;  %v2785_v42 = vpop.f32.mrb[13].mxu1 }
 0x783   :  { %v1246_v43 = vrot.slane %v1236_v40, %v3497_v19 }
 0x785   :  { %v1247_v44 = vcombine.high %v1246_v43, %v1246_v43  ;;  %v1254_v46 = vrot.slane %v1246_v43, %v3497_v19  ;;  %v2583_v43 = vld [vmem:[#allocation7 + $0x1] ss:$0 sm:$0xff] }
 0x787   :  { %v1261_v48 = vrot.slane %v1247_v44, %v3497_v19  ;;  %v1264_v49 = vadd.f32 %v1254_v46, %v1039_v3  ;;  %v2914_v3 = vpack.c.bf16 %v2582_v2, %v2581_v62 }
 0x789   :  { %v1265_v50 = vadd.f32 %v1261_v48, %v1040_v4  ;;  %v1290_v59 = vmul.f32 %v1264_v49, %v1264_v49  ;;  %2915 = vmatpush3.bf16.msra.mxu0 %v2914_v3 }
 0x78a   :  { %2916 = vmatprep.subr.bf16.mxu0 %v3240_v0 }
 0x78b   :  { %v1270_v51 = vcombine.low %v1264_v49, %v1265_v50  ;;  %v1291_v52 = vmul.f32 %v1265_v50, %v1265_v50 }
 0x78d   :  { %v1277_v53 = vrot.slane %v1270_v51, %v3497_v19  ;;  %v1294_v54 = vcombine.low %v1290_v59, %v1291_v52 }
 0x78f   :  { %v1284_v55 = vrot.slane %v1277_v53, %v3497_v19  ;;  %v1301_v56 = vrot.slane %v1294_v54, %v3497_v19 }
 0x791   :  { %v1286_v57 = vsel %vm919_vm7, %v1284_v55, 0.0  ;;  %v1308_v13 = vrot.slane %v1301_v56, %v3497_v19 }
 0x792   :  { %1287 = vadd.xlane.f32.xlu0 %v1286_v57 }
 0x793   :  { %v1310_v58 = vsel %vm919_vm7, %v1308_v13, 0.0 }
 0x796   :  { %1311 = vadd.xlane.f32.xlu0 %v1310_v58 }
 0x7ac   :  { %1545 = vrot.lane.b32.xlu0 %v3548_v41, %s3245_s28 }
 0x7b0   :  { %1883 = vrot.lane.b32.xlu0 %v3540_v35, %s3246_s2 }
 0x81f   :  { %v1288_v4 = vpop.xlane.xlu0 %1287 }
 0x820   :  { %v1289_v5 = vmul.f32 0.03125, %v1288_v4 }
 0x822   :  { %v1314_v7 = vmul.f32 %v1289_v5, %v1289_v5  ;;  %v1320_v20 = vrot.slane %v1289_v5, %v3555_v47  ;;  %v1324_v21 = vrot.slane %v1289_v5, %v3660_v45 }
 0x823   :  { %v1312_v6 = vpop.xlane.xlu0 %1311 }
 0x824   :  { %v1313_v8 = vmul.f32 0.03125, %v1312_v6  ;;  %v1327_v14 = vsub.f32 %v1264_v49, %v1320_v20  ;;  %v1328_v15 = vsub.f32 %v1265_v50, %v1324_v21 }
 0x826   :  { %v1315_v9 = vsub.f32 %v1313_v8, %v1314_v7 }
 0x827   :  { %v1546_v57 = vpop.permute.xlu0 %1545 }
 0x828   :  { %v1329_v10 = vadd.f32 1e-05, %v1315_v9 }
 0x82a   :  { %2979 = vrsqrt.f32 %v1329_v10 }
 0x834   :  { %v2980_v23 = vpop.eup %2979 }
 0x835   :  { %v1335_v26 = vrot.slane %v2980_v23, %v3555_v47  ;;  %v1339_v27 = vrot.slane %v2980_v23, %v3660_v45 }
 0x837   :  { %v1342_v28 = vmul.f32 %v1335_v26, %v1327_v14  ;;  %v1343_v30 = vmul.f32 %v1339_v27, %v1328_v15 }
 0x839   :  { %v1373_v33 = vmul.f32 %v1363_v24, %v1342_v28  ;;  %v1374_v36 = vmul.f32 %v1370_v25, %v1343_v30 }
 0x83b   :  { %v3750_v37 = vadd.f32 %v1394_v31, %v1373_v33  ;;  %v3752_v38 = vadd.f32 %v1401_v32, %v1374_v36 }
 0x83d   :  { %v1421_v39 = vcombine.low %v3750_v37, %v3752_v38 }
 0x83f   :  { %v1428_v40 = vrot.slane %v1421_v39, %v3497_v19 }
 0x841   :  { %v1435_v42 = vrot.slane %v1428_v40, %v3497_v19 }
 0x843   :  { %2795 = vmatmul.mubr.msk.f32.vlgmr.msra.gmra.mrb[8].mxu0 %vm202_vm1, %v1435_v42 }
 0x844   :  { %2918 = vmatpush3.bf16.msra.mxu0 %v3525_v29  ;;  %2805 = vmatprep.mubr.msk.f32.mxu0 %vm3241_vm0, %v3242_v1 }
 0x845   :  { %2919 = vmatprep.subr.bf16.mxu0 %v3240_v0 }
 0x848   :  { %2921 = vmatpush3.bf16.msra.mxu0 %v3538_v34 }
 0x849   :  { %2922 = vmatprep.subr.bf16.mxu0 %v3240_v0 }
 0x916   :  { %v1504_v44 = vpop.f32.mrb[8].mxu0 }
 0x917   :  { %v1505_v46 = vadd.f32 %v2583_v43, %v1504_v44  ;;  %v2796_v48 = vpop.f32.mrb[9].mxu0 }
 0x919   :  { %1541 = vrot.lane.b32.xlu1 %v1505_v46, %s3244_s3  ;;  %v1515_v29 = vrot.slane %v1505_v46, %v3497_v19 }
 0x91b   :  { %v1523_v50 = vrot.slane %v1515_v29, %v3497_v19  ;;  %v1516_v52 = vcombine.high %v1515_v29, %v1515_v29 }
 0x91d   :  { %1547 = vrot.lane.b32.xlu1 %v3540_v35, %s3245_s28  ;;  %v1534_v35 = vrot.slane %v1523_v50, %v3555_v47  ;;  %v1530_v56 = vrot.slane %v1516_v52, %v3497_v19 }
 0x91f   :  { %v1551_v13 = vmul.f32 %v1546_v57, %v1534_v35  ;;  %v1538_v60 = vrot.slane %v1530_v56, %v3555_v47 }
 0x921   :  { %1881 = vrot.lane.b32.xlu1 %v3548_v41, %s3246_s2 }
 0x925   :  { %1877 = vrot.lane.b32.xlu1 %v1505_v46, %s3245_s28 }
 0x98b   :  { %v1542_v49 = vpop.permute.xlu1 %1541 }
 0x98c   :  { %v1544_v34 = vmul.f32 %v1542_v49, %v1505_v46 }
 0x98e   :  { %v1554_v51 = vrot.slane %v1544_v34, 6  ;;  %v1556_v59 = vrot.slane %v1544_v34, 4  ;;  %v1558_v53 = vrot.slane %v1544_v34, 2 }
 0x98f   :  { %v1548_v58 = vpop.permute.xlu1 %1547 }
 0x990   :  { %v1560_v54 = vsel %vm430_vm2, %v1544_v34, %v1554_v51  ;;  %v1552_v61 = vmul.f32 %v1548_v58, %v1538_v60 }
 0x991   :  { %v1561_v55 = vsel %vm432_vm3, %v1560_v54, %v1556_v59 }
 0x992   :  { %v1562_v41 = vsel %vm434_vm4, %v1561_v55, %v1558_v53 }
 0x993   :  { %2806 = vmatmul.mubr.msk.f32.vlgmr.msra.gmra.mrb[10].mxu0 %vm202_vm1, %v1562_v41 }
 0x994   :  { %2808 = vmatprep.mubr.msk.f32.mxu0 %vm3241_vm0, %v3242_v1 }
 0x997   :  { %2809 = vmatmul.mubr.msk.f32.gmra.mrb[12].mxu0 %vm202_vm1, %v1551_v13 }
 0x998   :  { %2811 = vmatprep.mubr.msk.f32.mxu0 %vm3241_vm0, %v3242_v1 }
 0x99b   :  { %2812 = vmatmul.mubr.msk.f32.gmra.mrb[14].mxu0 %vm202_vm1, %v1552_v61 }
 0x99c   :  { %2833 = vmatprep.mubr.msk.f32.mxu0 %vm3241_vm0, %v3242_v1 }
 0xa66   :  { %v1638_v62 = vpop.f32.mrb[10].mxu0 }
 0xa67   :  { %v2807_v63 = vpop.f32.mrb[11].mxu0 }
 0xa6a   :  { %v1643_v2 = vpop.f32.mrb[12].mxu0 }
 0xa6b   :  { %v1652_v3 = vsel %vm525_vm5, %v1643_v2, -inf  ;;  %v2810_v4 = vpop.f32.mrb[13].mxu0 }
 0xa6c   :  { %v1653_v5 = vrot.slane %v1652_v3, 4 }
 0xa6e   :  { %v1654_v6 = vmax.f32 %v1652_v3, %v1653_v5  ;;  %v1648_v7 = vpop.f32.mrb[14].mxu0 }
 0xa6f   :  { %v1659_v8 = vsel %vm525_vm5, %v1648_v7, -inf  ;;  %v2813_v9 = vpop.f32.mrb[15].mxu0 }
 0xa70   :  { %v1655_v10 = vrot.slane %v1654_v6, 2  ;;  %v1660_v11 = vrot.slane %v1659_v8, 4 }
 0xa72   :  { %v1656_v12 = vmax.f32 %v1654_v6, %v1655_v10  ;;  %v1661_v16 = vmax.f32 %v1659_v8, %v1660_v11 }
 0xa74   :  { %v1662_v17 = vrot.slane %v1661_v16, 2  ;;  %v1657_v18 = vrot.slane %v1656_v12, 1 }
 0xa76   :  { %v1663_v20 = vmax.f32 %v1661_v16, %v1662_v17  ;;  %v1658_v22 = vmax.f32 %v1656_v12, %v1657_v18 }
 0xa78   :  { %v1664_v21 = vrot.slane %v1663_v20, 1 }
 0xa7a   :  { %v1665_v23 = vmax.f32 %v1663_v20, %v1664_v21 }
 0xa7c   :  { %v1668_v24 = vsel %vm542_vm6, %v1665_v23, %v1658_v22  ;;  %v2592_v22 = vld [vmem:[%s3947_s6 + $0x20] sm:$0xff]  ;;  %v2593_v23 = vld [vmem:[%s3947_s6 + $0x28] sm:$0xff] }
 0xa7d   :  { %v1670_v25 = vmax.f32 %v1638_v62, %v1668_v24  ;;  %v2923_v24 = vpack.c.bf16 %v2593_v23, %v2592_v22 }
 0xa7f   :  { %v1678_v14 = vrot.slane %v1670_v25, %v3497_v19  ;;  %v1704_v15 = vrot.slane %v1670_v25, 6  ;;  %v1706_v26 = vrot.slane %v1670_v25, 4  ;;  %v1708_v30 = vrot.slane %v1670_v25, 2  ;;  %2924 = vmatpush3.bf16.msra.mxu0 %v2923_v24 }
 0xa80   :  { %2925 = vmatprep.subr.bf16.mxu0 %v3240_v0 }
 0xa81   :  { %v1679_v27 = vcombine.high %v1678_v14, %v1678_v14  ;;  %v1686_v28 = vrot.slane %v1678_v14, %v3497_v19  ;;  %v1710_v31 = vsel %vm430_vm2, %v1670_v25, %v1704_v15  ;;  %v2594_v25 = vld [vmem:[%s3947_s6 + $0x30] sm:$0xff]  ;;  %v2595_v14 = vld [vmem:[%s3947_s6 + $0x38] sm:$0xff] }
 0xa82   :  { %v1711_v32 = vsel %vm432_vm3, %v1710_v31, %v1706_v26  ;;  %v2926_v15 = vpack.c.bf16 %v2595_v14, %v2594_v25 }
 0xa83   :  { %v1693_v33 = vrot.slane %v1679_v27, %v3497_v19  ;;  %v1697_v36 = vrot.slane %v1686_v28, %v3555_v47  ;;  %v1712_v39 = vsel %vm434_vm4, %v1711_v32, %v1708_v30  ;;  %v1882_v28 = vpop.permute.xlu1 %1881 }
 0xa84   :  { %v1713_v40 = vsub.f32 %v1638_v62, %v1712_v39  ;;  %2927 = vmatpush3.bf16.msra.mxu0 %v2926_v15 }
 0xa85   :  { %v1701_v42 = vrot.slane %v1693_v33, %v3555_v47  ;;  %v1714_v43 = vsub.f32 %v1643_v2, %v1697_v36  ;;  %2934 = vmatprep.subr.bf16.mxu0 %v3240_v0  ;;  %v1884_v36 = vpop.permute.xlu0 %1883 }
 0xa86   :  { %v1716_v51 = vmul.f32 1.442695, %v1713_v40 }
 0xa87   :  { %v1715_v44 = vsub.f32 %v1648_v7, %v1701_v42  ;;  %v1718_v46 = vmul.f32 1.442695, %v1714_v43 }
 0xa89   :  { %2981 = vpow2.f32 %v1718_v46  ;;  %v1720_v48 = vmul.f32 1.442695, %v1715_v44 }
 0xa8b   :  { %2983 = vpow2.f32 %v1720_v48 }
 0xa8c   :  { %2985 = vpow2.f32 %v1716_v51 }
 0xa93   :  { %v2982_v29 = vpop.eup %2981 }
 0xa94   :  { %v1722_v49 = vsel %vm525_vm5, %v2982_v29, 0.0 }
 0xa95   :  { %v2984_v34 = vpop.eup %2983  ;;  %v1723_v50 = vrot.slane %v1722_v49, 4 }
 0xa96   :  { %v1729_v59 = vsel %vm525_vm5, %v2984_v34, 0.0  ;;  %v2986_v61 = vpop.eup %2985 }
 0xa97   :  { %v1724_v52 = vadd.f32 %v1723_v50, %v1722_v49  ;;  %v1730_v53 = vrot.slane %v1729_v59, 4 }
 0xa99   :  { %v1725_v54 = vrot.slane %v1724_v52, 2  ;;  %v1731_v55 = vadd.f32 %v1730_v53, %v1729_v59  ;;  %v1878_v53 = vpop.permute.xlu1 %1877 }
 0xa9b   :  { %v1726_v35 = vadd.f32 %v1725_v54, %v1724_v52  ;;  %v1732_v41 = vrot.slane %v1731_v55, 2 }
 0xa9d   :  { %v1727_v56 = vrot.slane %v1726_v35, 1  ;;  %v1733_v57 = vadd.f32 %v1732_v41, %v1731_v55 }
 0xa9f   :  { %v1734_v13 = vrot.slane %v1733_v57, 1  ;;  %v1728_v58 = vadd.f32 %v1727_v56, %v1726_v35 }
 0xaa1   :  { %v1735_v60 = vadd.f32 %v1734_v13, %v1733_v57  ;;  %v2596_v57 = vld [vmem:[#allocation8 + $0x1] ss:$0 sm:$0xff] }
 0xaa3   :  { %v1738_v62 = vsel %vm542_vm6, %v1735_v60, %v1728_v58 }
 0xaa4   :  { %v1740_v63 = vadd.f32 %v2986_v61, %v1738_v62 }
 0xaa6   :  { %2987 = vrcp.f32 %v1740_v63 }
 0xab0   :  { %v2988_v2 = vpop.eup %2987 }
 0xab1   :  { %v1776_v3 = vrot.slane %v2988_v2, 6  ;;  %v1778_v4 = vrot.slane %v2988_v2, 4  ;;  %v1750_v5 = vrot.slane %v2988_v2, %v3497_v19  ;;  %v1780_v6 = vrot.slane %v2988_v2, 2 }
 0xab3   :  { %v1782_v7 = vsel %vm430_vm2, %v2988_v2, %v1776_v3  ;;  %v1758_v8 = vrot.slane %v1750_v5, %v3497_v19  ;;  %v1751_v9 = vcombine.high %v1750_v5, %v1750_v5 }
 0xab4   :  { %v1783_v10 = vsel %vm432_vm3, %v1782_v7, %v1778_v4 }
 0xab5   :  { %v1784_v11 = vsel %vm434_vm4, %v1783_v10, %v1780_v6  ;;  %v1769_v12 = vrot.slane %v1758_v8, %v3555_v47  ;;  %v1765_v16 = vrot.slane %v1751_v9, %v3497_v19 }
 0xab6   :  { %v1785_v17 = vmul.f32 %v2986_v61, %v1784_v11 }
 0xab7   :  { %v1786_v18 = vmul.f32 %v2982_v29, %v1769_v12  ;;  %v1773_v20 = vrot.slane %v1765_v16, %v3555_v47 }
 0xab8   :  { %2817 = vmatmul.mubr.msk.f32.vlgmr.msra.gmra.mrb[14].mxu1 %vm525_vm5, %v1785_v17 }
 0xab9   :  { %2819 = vmatprep.mubr.msk.f32.mxu1 %vm3241_vm0, %v3242_v1  ;;  %v1787_v21 = vmul.f32 %v2984_v34, %v1773_v20  ;;  %v2603_v20 = vld [vmem:[%s3951_s10 + $0x38] sm:$0xff] }
 0xabc   :  { %2820 = vmatmul.mubr.msk.f32.gmra.mrb[16].mxu1 %vm525_vm5, %v1786_v18  ;;  %v2602_v18 = vld [vmem:[%s3951_s10 + $0x30] sm:$0xff] }
 0xabd   :  { %2822 = vmatprep.mubr.msk.f32.mxu1 %vm3241_vm0, %v3242_v1 }
 0xac0   :  { %2823 = vmatmul.mubr.msk.f32.gmra.mrb[18].mxu1 %vm525_vm5, %v1787_v21  ;;  %v2932_v21 = vpack.c.bf16 %v2603_v20, %v2602_v18  ;;  %v2614_v18 = vld [vmem:[#allocation14 + $0x1] ss:$0 sm:$0xff] }
 0xac1   :  { %2844 = vmatprep.mubr.msk.f32.mxu1 %vm3241_vm0, %v3242_v1 }
 0xb8b   :  { %v1863_v26 = vpop.f32.mrb[14].mxu1 }
 0xb8c   :  { %v2818_v27 = vpop.f32.mrb[15].mxu1  ;;  %v1880_v35 = vmul.f32 %v1878_v53, %v1863_v26 }
 0xb8d   :  { %v2598_v27 = vld [vmem:[#allocation10 + $0x1] ss:$0 sm:$0xff] }
 0xb8f   :  { %v1868_v30 = vpop.f32.mrb[16].mxu1 }
 0xb90   :  { %v1887_v31 = vmul.f32 %v1882_v28, %v1868_v30  ;;  %v2821_v32 = vpop.f32.mrb[17].mxu1  ;;  %v2599_v28 = vld [vmem:[#allocation11 + $0x1] ss:$0 sm:$0xff]  ;;  %v2112_v30 = vrot.slane %v2598_v27, %v3497_v19 }
 0xb92   :  { %v1889_v33 = vsel %vm202_vm1, %v1887_v31, 0.0  ;;  %v2143_v31 = vrot.slane %v2599_v28, %v3497_v19  ;;  %v2113_v32 = vcombine.high %v2112_v30, %v2112_v30 }
 0xb93   :  { %v1890_v39 = vrot.slane %v1889_v33, 4  ;;  %v1873_v40 = vpop.f32.mrb[18].mxu1 }
 0xb94   :  { %v1888_v42 = vmul.f32 %v1884_v36, %v1873_v40  ;;  %v2824_v43 = vpop.f32.mrb[19].mxu1 }
 0xb95   :  { %v1891_v44 = vadd.f32 %v1890_v39, %v1889_v33  ;;  %v2144_v39 = vcombine.high %v2143_v31, %v2143_v31  ;;  %v2127_v43 = vrot.slane %v2113_v32, %v3497_v19 }
 0xb96   :  { %v1896_v46 = vsel %vm202_vm1, %v1888_v42, 0.0  ;;  %v2120_v42 = vrot.slane %v2112_v30, %v3497_v19 }
 0xb97   :  { %v1892_v48 = vrot.slane %v1891_v44, 2  ;;  %v1897_v29 = vrot.slane %v1896_v46, 4 }
 0xb99   :  { %v1893_v49 = vadd.f32 %v1892_v48, %v1891_v44  ;;  %v1898_v34 = vadd.f32 %v1897_v29, %v1896_v46 }
 0xb9b   :  { %v1899_v50 = vrot.slane %v1898_v34, 2  ;;  %v1894_v51 = vrot.slane %v1893_v49, 1 }
 0xb9d   :  { %v1900_v59 = vadd.f32 %v1899_v50, %v1898_v34  ;;  %v1895_v54 = vadd.f32 %v1894_v51, %v1893_v49  ;;  %v2151_v49 = vrot.slane %v2143_v31, %v3497_v19  ;;  %v2158_v34 = vrot.slane %v2144_v39, %v3497_v19 }
 0xb9f   :  { %v1901_v52 = vrot.slane %v1900_v59, 1 }
 0xba1   :  { %v1902_v55 = vadd.f32 %v1901_v52, %v1900_v59 }
 0xba3   :  { %v1905_v41 = vsel %vm542_vm6, %v1902_v55, %v1895_v54 }
 0xba4   :  { %v1907_v56 = vadd.f32 %v1905_v41, %v1880_v35 }
 0xba6   :  { %2834 = vmatmul.mubr.msk.f32.vlgmr.msra.gmra.mrb[16].mxu0 %vm202_vm1, %v1907_v56  ;;  %v2606_v56 = vld [vmem:[%s3953_s12 + $0x40] sm:$0xff] }
 0xba7   :  { %2863 = vmatprep.mubr.msk.f32.mxu0 %vm3241_vm0, %v3242_v1 }
 0xc79   :  { %v1990_v13 = vpop.f32.mrb[16].mxu0 }
 0xc7a   :  { %v1991_v58 = vadd.f32 %v2596_v57, %v1990_v13  ;;  %v2835_v60 = vpop.f32.mrb[17].mxu0  ;;  %v2607_v57 = vld [vmem:[%s3953_s12 + $0x48] sm:$0xff] }
 0xc7b   :  { %v2935_v13 = vpack.c.bf16 %v2607_v57, %v2606_v56  ;;  %v2609_v60 = vld [vmem:[%s3953_s12 + $0x58] sm:$0xff] }
 0xc7c   :  { %v2001_v61 = vrot.slane %v1991_v58, %v3497_v19  ;;  %v2608_v58 = vld [vmem:[%s3953_s12 + $0x50] sm:$0xff] }
 0xc7d   :  { %2936 = vmatpush3.bf16.msra.mxu0 %v2935_v13 }
 0xc7e   :  { %v2002_v62 = vcombine.high %v2001_v61, %v2001_v61  ;;  %v2009_v63 = vrot.slane %v2001_v61, %v3497_v19  ;;  %2937 = vmatprep.subr.bf16.mxu0 %v3240_v0  ;;  %v2938_v61 = vpack.c.bf16 %v2609_v60, %v2608_v58 }
 0xc80   :  { %v2016_v2 = vrot.slane %v2002_v62, %v3497_v19  ;;  %v2019_v3 = vadd.f32 %v2009_v63, %v3750_v37  ;;  %v2600_v37 = vld [vmem:[%s3951_s10 + $0x20] sm:$0xff]  ;;  %v2611_v63 = vld [vmem:[%s3953_s12 + $0x68] sm:$0xff] }
 0xc81   :  { %2939 = vmatpush3.bf16.msra.mxu0 %v2938_v61  ;;  %v2610_v62 = vld [vmem:[%s3953_s12 + $0x60] sm:$0xff] }
 0xc82   :  { %v2020_v4 = vadd.f32 %v2016_v2, %v3752_v38  ;;  %v2047_v6 = vmul.f32 %v2019_v3, %v2019_v3  ;;  %v2601_v38 = vld [vmem:[%s3951_s10 + $0x28] sm:$0xff]  ;;  %2940 = vmatprep.subr.bf16.mxu0 %v3240_v0  ;;  %v2941_v2 = vpack.c.bf16 %v2611_v63, %v2610_v62 }
 0xc83   :  { %v2929_v17 = vpack.c.bf16 %v2601_v38, %v2600_v37 }
 0xc84   :  { %v2027_v5 = vcombine.low %v2019_v3, %v2020_v4  ;;  %v2048_v7 = vmul.f32 %v2020_v4, %v2020_v4 }
 0xc85   :  { %2930 = vmatpush3.bf16.msra.mxu1 %v2929_v17  ;;  %2942 = vmatpush3.bf16.msra.mxu0 %v2941_v2 }
 0xc86   :  { %v2034_v1 = vrot.slane %v2027_v5, %v3497_v19  ;;  %v2051_v8 = vcombine.low %v2047_v6, %v2048_v7  ;;  %2931 = vmatprep.subr.bf16.mxu1 %v3240_v0  ;;  %2943 = vmatprep.subr.bf16.mxu0 %v3240_v0  ;;  %v2604_v6 = vld [vmem:[#allocation13 + $0x1] ss:$0 sm:$0xff] }
 0xc88   :  { %v2041_v9 = vrot.slane %v2034_v1, %v3497_v19  ;;  %v2058_v10 = vrot.slane %v2051_v8, %v3497_v19 }
 0xc89   :  { %2933 = vmatpush3.bf16.msra.mxu1 %v2932_v21 }
 0xc8a   :  { %v2043_v11 = vsel %vm919_vm7, %v2041_v9, 0.0  ;;  %v2065_v12 = vrot.slane %v2058_v10, %v3497_v19 }
 0xc8b   :  { %2044 = vadd.xlane.f32.xlu0 %v2043_v11 }
 0xc8c   :  { %v2067_v16 = vsel %vm919_vm7, %v2065_v12, 0.0 }
 0xc8d   :  { %2068 = vadd.xlane.f32.xlu1 %v2067_v16 }
 0xd18   :  { %v2045_v22 = vpop.xlane.xlu0 %2044 }
 0xd19   :  { %v2046_v23 = vmul.f32 0.03125, %v2045_v22 }
 0xd1a   :  { %v2069_v24 = vpop.xlane.xlu1 %2068 }
 0xd1b   :  { %v2070_v25 = vmul.f32 0.03125, %v2069_v24  ;;  %v2071_v14 = vmul.f32 %v2046_v23, %v2046_v23  ;;  %v2077_v33 = vrot.slane %v2046_v23, %v3555_v47  ;;  %v2081_v36 = vrot.slane %v2046_v23, %v3660_v45 }
 0xd1d   :  { %v2072_v15 = vsub.f32 %v2070_v25, %v2071_v14  ;;  %v2084_v44 = vsub.f32 %v2019_v3, %v2077_v33  ;;  %v2085_v46 = vsub.f32 %v2020_v4, %v2081_v36  ;;  %v2612_v3 = vld [vmem:[%s3953_s12 + $0x70] sm:$0xff]  ;;  %v2613_v4 = vld [vmem:[%s3953_s12 + $0x78] sm:$0xff] }
 0xd1e   :  { %v2944_v5 = vpack.c.bf16 %v2613_v4, %v2612_v3 }
 0xd1f   :  { %v2086_v26 = vadd.f32 1e-05, %v2072_v15 }
 0xd20   :  { %2945 = vmatpush3.bf16.msra.mxu0 %v2944_v5 }
 0xd21   :  { %2989 = vrsqrt.f32 %v2086_v26 }
 0xd2b   :  { %v2990_v40 = vpop.eup %2989 }
 0xd2c   :  { %v2092_v48 = vrot.slane %v2990_v40, %v3555_v47  ;;  %v2096_v29 = vrot.slane %v2990_v40, %v3660_v45 }
 0xd2e   :  { %v2099_v50 = vmul.f32 %v2092_v48, %v2084_v44  ;;  %v2100_v51 = vmul.f32 %v2096_v29, %v2085_v46 }
 0xd30   :  { %v2130_v59 = vmul.f32 %v2120_v42, %v2099_v50  ;;  %v2131_v52 = vmul.f32 %v2127_v43, %v2100_v51  ;;  %v2617_v50 = vld [vmem:[#allocation16 + $0x1] ss:$0 sm:$0xff]  ;;  %v2618_v51 = vld [vmem:[%s3973_s7 + $0x1] ss:$0 sm:$0xff]  ;;  %s3247_s7 = smov [#allocation17]  }
 0xd31   :  { %s2541_s24 = sshll.u32 %s3247_s7, 4  ;;  %s2542_s24 = int_to_ptr.vmem [resolvable:$true] %s2541_s24 }
 0xd32   :  { %v2161_v53 = vadd.f32 %v2151_v49, %v2130_v59  ;;  %v2162_v54 = vadd.f32 %v2158_v34, %v2131_v52  ;;  %v2482_v59 = vrot.slane %v2617_v50, %v3497_v19  ;;  %v2513_v52 = vrot.slane %v2618_v51, %v3497_v19  ;;  %s3193_s29 = scalar_lea.vmem %s2542_s24, 32  ;;  %p3198_p3 = scmp.lt.s32.totalorder %s2542_s24, %s2542_s24 }
 0xd33   :  { %p3194_p2 = scmp.ne.s32.totalorder %s2542_s24, %s3193_s29  ;;  %p3199_p4 = scmp.lt.s32.totalorder %s3193_s29, %s3193_s29 }
 0xd34   :  { %v2178_v55 = vcombine.low %v2161_v53, %v2162_v54  ;;  %v2490_v56 = vrot.slane %v2482_v59, %v3497_v19  ;;  %v2521_v2 = vrot.slane %v2513_v52, %v3497_v19 }
 0xd35   :  { %p3200_p5 = por %p3199_p4, %p3198_p3 }
 0xd36   :  { %v2185_v35 = vrot.slane %v2178_v55, %v3497_v19 }
 0xd37   :  { %p3201_p6 = pnand %p3200_p5, %p3194_p2 }
 0xd38   :  { %v2192_v41 = vrot.slane %v2185_v35, %v3497_v19  ;;  %v2514_v35 = vcombine.high %v2513_v52, %v2513_v52 }
 0xd3a   :  { %2845 = vmatmul.mubr.msk.f32.vlgmr.msra.gmra.mrb[20].mxu1 %vm202_vm1, %v2192_v41  ;;  %v2528_v3 = vrot.slane %v2514_v35, %v3497_v19 }
 0xe0d   :  { %v2261_v7 = vpop.f32.mrb[20].mxu1 }
 0xe0e   :  { %v2262_v1 = vadd.f32 %v2604_v6, %v2261_v7  ;;  %v2846_v8 = vpop.f32.mrb[21].mxu1 }
 0xe10   :  { %v2265_v9 = vmul.f32 %v2262_v1, %v2262_v1 }
 0xe12   :  { %v2266_v10 = vmul.f32 %v2265_v9, %v2262_v1 }
 0xe14   :  { %v2267_v11 = vmul.f32 0.044715, %v2266_v10 }
 0xe16   :  { %v2268_v12 = vadd.f32 %v2267_v11, %v2262_v1 }
 0xe18   :  { %v2269_v16 = vmul.f32 0.7978846, %v2268_v12 }
 0xe1a   :  { %2991 = vtanh.f32 %v2269_v16 }
 0xe24   :  { %v2992_v0 = vpop.eup %2991 }
 0xe25   :  { %v2271_v37 = vadd.f32 1.0, %v2992_v0 }
 0xe27   :  { %v2272_v38 = vmul.f32 0.5, %v2271_v37 }
 0xe29   :  { %v2273_v17 = vmul.f32 %v2272_v38, %v2262_v1 }
 0xe2b   :  { %2864 = vmatmul.mubr.msk.f32.vlgmr.msra.gmra.mrb[18].mxu0 %vm1165_vm8, %v2273_v17 }
 0xefe   :  { %v2360_v20 = vpop.f32.mrb[18].mxu0 }
 0xeff   :  { %v2361_v21 = vadd.f32 %v2614_v18, %v2360_v20  ;;  %v2865_v22 = vpop.f32.mrb[19].mxu0 }
 0xf01   :  { %v2371_v23 = vrot.slane %v2361_v21, %v3497_v19 }
 0xf03   :  { %v2372_v24 = vcombine.high %v2371_v23, %v2371_v23  ;;  %v2379_v25 = vrot.slane %v2371_v23, %v3497_v19 }
 0xf05   :  { %v2386_v14 = vrot.slane %v2372_v24, %v3497_v19  ;;  %v2389_v15 = vadd.f32 %v2379_v25, %v2161_v53  ;;  %v2483_v53 = vcombine.high %v2482_v59, %v2482_v59 }
 0xf07   :  { %v2390_v26 = vadd.f32 %v2386_v14, %v2162_v54  ;;  %v2417_v28 = vmul.f32 %v2389_v15, %v2389_v15  ;;  %v2497_v57 = vrot.slane %v2483_v53, %v3497_v19 }
 0xf09   :  { %v2397_v27 = vcombine.low %v2389_v15, %v2390_v26  ;;  %v2418_v30 = vmul.f32 %v2390_v26, %v2390_v26 }
 0xf0b   :  { %v2404_v31 = vrot.slane %v2397_v27, %v3497_v19  ;;  %v2421_v32 = vcombine.low %v2417_v28, %v2418_v30 }
 0xf0d   :  { %v2411_v33 = vrot.slane %v2404_v31, %v3497_v19  ;;  %v2428_v36 = vrot.slane %v2421_v32, %v3497_v19 }
 0xf0f   :  { %v2413_v39 = vsel %vm919_vm7, %v2411_v33, 0.0  ;;  %v2435_v40 = vrot.slane %v2428_v36, %v3497_v19 }
 0xf10   :  { %2414 = vadd.xlane.f32.xlu0 %v2413_v39 }
 0xf11   :  { %v2437_v42 = vsel %vm919_vm7, %v2435_v40, 0.0 }
 0xf14   :  { %2438 = vadd.xlane.f32.xlu0 %v2437_v42 }
 0xf9d   :  { %v2415_v43 = vpop.xlane.xlu0 %2414 }
 0xf9e   :  { %v2416_v44 = vmul.f32 0.03125, %v2415_v43 }
 0xfa0   :  { %v2441_v48 = vmul.f32 %v2416_v44, %v2416_v44  ;;  %v2447_v54 = vrot.slane %v2416_v44, %v3555_v47  ;;  %v2451_v55 = vrot.slane %v2416_v44, %v3660_v45 }
 0xfa1   :  { %v2439_v46 = vpop.xlane.xlu0 %2438 }
 0xfa2   :  { %v2440_v29 = vmul.f32 0.03125, %v2439_v46  ;;  %v2454_v13 = vsub.f32 %v2389_v15, %v2447_v54  ;;  %v2455_v58 = vsub.f32 %v2390_v26, %v2451_v55 }
 0xfa4   :  { %v2442_v49 = vsub.f32 %v2440_v29, %v2441_v48 }
 0xfa6   :  { %v2456_v34 = vadd.f32 1e-05, %v2442_v49 }
 0xfa8   :  { %2993 = vrsqrt.f32 %v2456_v34 }
 0xfb2   :  { %v2994_v41 = vpop.eup %2993 }
 0xfb3   :  { %v2462_v60 = vrot.slane %v2994_v41, %v3555_v47  ;;  %v2466_v61 = vrot.slane %v2994_v41, %v3660_v45 }
 0xfb5   :  { %v2469_v62 = vmul.f32 %v2462_v60, %v2454_v13  ;;  %v2470_v63 = vmul.f32 %v2466_v61, %v2455_v58 }
 0xfb7   :  { %v2500_v4 = vmul.f32 %v2490_v56, %v2469_v62  ;;  %v2501_v5 = vmul.f32 %v2497_v57, %v2470_v63 }
 0xfb9   :  { %v2531_v6 = vadd.f32 %v2521_v2, %v2500_v4  ;;  %v2532_v7 = vadd.f32 %v2528_v3, %v2501_v5 }
 0xfbb   :  { %2534 = vst.msk [vmem:[#allocation17] sm:$0x1] %vm2533_vm9, %v2531_v6  ;;  %2535 = vst.msk [vmem:[#allocation17 + $0x1] sm:$0x1] %vm2533_vm9, %v2532_v7 }
 0xfbc   :  { %3204 = shalt.err (!%p3201_p6)
}
 0xfbd   :  { %s3974_s18 = sld [smem:[#allocation28_spill]] }
 0xfc3   :  { %s3205_s26 = scalar_lea.hbm %s3974_s18, 32 }
 0xfc4   :  { %p3206_p7 = scmp.ne.s32.totalorder %s3974_s18, %s3205_s26  ;;  %p3209_p8 = scmp.lt.u32.totalorder %s3205_s26, %s3974_s18 }
 0xfc6   :  { %p3211_p9 = pnand %p3209_p8, %p3206_p7 }
 0xfc8   :  { %3214 = shalt.err (!%p3211_p9)
}
 0xfc9   :  { %2547 = dma.vmem_to_hbm [thread:$0]  %s2542_s24, 32, %s3974_s18, [#allocation4], %s3232_s0, %s3232_s0, %s3233_s23  }
 0xfca   :  { %3225 = dma.done.wait [#allocation4], 32  }
 0xfcb   :  { %3226 = vsyncadd [#allocation4], 4294967264 }
 0xfcc   :  { %2551 = vsyncpa [#allocation3], 1 }
 0xfcd   :  { %2552 = vsyncpa [#allocation6], 1 }
 0xfce   :  { %2553 = vsyncpa [#allocation9], 1 }
 0xfcf   :  { %2554 = vsyncpa [#allocation12], 1 }
 0xfd0   :  { %2555 = vsyncpa [#allocation15], 1 }
 0xfd1   :  { %2556 = vsyncpa [#allocation4], 1 }

</bundles_post_ra>
